<compile_context>
chip_gen: v7x
topology: tpu7x:2x2x1
jax: 0.10.0
libtpu: 0.0.40
codegen_flags: <defaults>
</compile_context>

<pallas_src>
import functools

import jax
import jax.numpy as jnp
from jax.experimental import pallas as pl
from jax.experimental.pallas import tpu as pltpu


def _round_up(x, m):
    return (x + m - 1) // m * m


# ----------------------------------------------------------------------------
# Fused attention + scatter-add Pallas kernel (flattened work-list grid)
# ----------------------------------------------------------------------------

def _sp_gat_layer_kernel(nt_ref, eb_ref, first_ref, last_ref, valid_ref,
                         em_ref, rows_ref, sel_ref, ssel_ref, mask_ref,
                         o_ref, acc_ref, *, alpha, tile_n):
    """One work item = (destination N tile, edge block) of one layer.

    Scalar prefetch (SMEM, per work item w):
      nt_ref[w]    : destination N-tile index (drives the output index map).
      eb_ref[w]    : edge-block index (drives the edge_m / rows index maps).
      first/last   : 1 on the first / last work item of this N tile.
      valid        : 0 for padding work items (skip all compute).
    VMEM blocks:
      em_ref  : (TILE_E, d_acc) bf16   pre-projected per-edge features; the
                score columns live at [d_total, d_total+nheads).
      rows_ref: (1, TILE_E) int32      destination node per edge (sorted),
                pad edges carry an out-of-range row.
      sel_ref : (hp, d_acc) f32        head -> column spreader (feature cols +
                that head's rowsum col).
      ssel_ref: (d_acc, hp) f32        score/rowsum column extractor.
      mask_ref: (1, d_acc) f32         1.0 on rowsum/pad columns, 0.0 on
                feature columns.
      o_ref   : (TILE_N, d_acc) bf16   output block (written once, at finalize).
    Scratch:
      acc_ref : (TILE_N, d_acc) f32    resident accumulator for the N tile.
    """
    w = pl.program_id(0)
    is_first = first_ref[w] != 0
    is_last = last_ref[w] != 0
    is_valid = valid_ref[w] != 0

    @pl.when(is_first)
    def _():
        acc_ref[...] = jnp.zeros_like(acc_ref)

    @pl.when(is_valid)
    def _():
        em = em_ref[...].astype(jnp.float32)               # (TILE_E, d_acc)

        # Per-head scores -> edge_e = exp(-leakyrelu(s)).
        s = jnp.dot(em, ssel_ref[...],
                    preferred_element_type=jnp.float32)    # (TILE_E, hp)
        lrelu = jnp.where(s > 0.0, s, alpha * s)
        edge_e = jnp.exp(-lrelu)

        # Spread edge_e over each head's feature cols and its rowsum col;
        # base = em on feature cols, 1.0 on rowsum/pad cols.
        mult = jnp.dot(edge_e, sel_ref[...],
                       preferred_element_type=jnp.float32)  # (TILE_E, d_acc)
        m = mask_ref[...]                                    # (1, d_acc)
        base = em * (1.0 - m) + m
        edge_w = (mult * base).astype(jnp.bfloat16)

        # Per-tile one-hot scatter matrix (never the full (N, E) one-hot).
        node_base = nt_ref[w] * tile_n
        rows_local = rows_ref[...] - node_base               # (1, TILE_E)
        iota_n = jax.lax.broadcasted_iota(
            jnp.int32, (tile_n, rows_local.shape[1]), 0)
        onehot = (iota_n == rows_local).astype(jnp.bfloat16)

        # One bf16 MXU matmul accumulates h_prime AND e_rowsum (fused cols).
        acc_ref[...] += jnp.dot(onehot, edge_w,
                                preferred_element_type=jnp.float32)

    @pl.when(is_last)
    def _():
        acc = acc_ref[...]
        rs = jnp.dot(acc, ssel_ref[...],
                     preferred_element_type=jnp.float32)     # per-head rowsums
        rs = jnp.where(rs == 0.0, 1e-12, rs)
        inv = pl.reciprocal(rs, approx=True)                 # EUP slot
        inv_spread = jnp.dot(inv, sel_ref[...],
                             preferred_element_type=jnp.float32)
        h = acc * inv_spread
        # ELU (reference applies F.elu inside concat-heads, and outside for the
        # final layer -- identical in eval mode, so fold it here).
        h = jnp.where(h > 0.0, h, jnp.exp(jnp.minimum(h, 0.0)) - 1.0)
        o_ref[...] = h.astype(o_ref.dtype)


def sp_graph_attention_layer(x, edge, edge_embed, edge_nhop, edge_embed_nhop,
                             a_list, a2_list, *, alpha):
    """All heads of one SpGraphAttentionLayer in a single fused pallas_call.

    Returns the padded (n_pad, d_acc) bf16 output; the logical result is
    out[:N, :nheads*nhid] (trailing columns are rowsum/pad columns and are
    zero-weighted by the next layer or sliced off by the caller).
    """
    nheads = len(a_list)
    nhid = a_list[0].shape[0]
    rel_dim = edge_embed.shape[1]
    in_dim = (a_list[0].shape[1] - rel_dim) // 2   # logical input feature dim
    d_total = nheads * nhid
    hp = _round_up(nheads, 8)
    d_acc = _round_up(d_total + hp, 128)
    N = x.shape[0]
    x_width = x.shape[1]                            # may be padded (>= in_dim)

    edge_all = jnp.concatenate([edge, edge_nhop], axis=1)            # (2, Et)
    embed_all = jnp.concatenate([edge_embed, edge_embed_nhop],
                                axis=0).astype(jnp.float32)          # (Et, r)
    e_total = edge_all.shape[1]

    # ---- Folded projection weights: rows [0,d_total) = stacked per-head a,
    #      rows [d_total, d_total+nheads) = a2 @ a (score rows), rest zero.
    A = jnp.concatenate([a.astype(jnp.float32) for a in a_list], axis=0)
    a_s = jnp.concatenate([a2.astype(jnp.float32) @ a.astype(jnp.float32)
                           for a, a2 in zip(a_list, a2_list)], axis=0)
    f_dim = 2 * in_dim + rel_dim
    w_fold = jnp.zeros((d_acc, f_dim), jnp.float32)
    w_fold = w_fold.at[:d_total].set(A)
    w_fold = w_fold.at[d_total:d_total + nheads].set(a_s)

    w_src = w_fold[:, :in_dim]
    w_dst = w_fold[:, in_dim:2 * in_dim]
    w_rel = w_fold[:, 2 * in_dim:]
    if x_width > in_dim:
        # x is the previous layer's padded bf16 output: zero-pad the projection
        # columns so its rowsum/pad columns contribute nothing.
        pad = jnp.zeros((d_acc, x_width - in_dim), jnp.float32)
        w_src = jnp.concatenate([w_src, pad], axis=1)
        w_dst = jnp.concatenate([w_dst, pad], axis=1)

    # ---- Node-level projections (O(N*F*D)) + per-edge relation projection.
    xf = x.astype(jnp.float32)
    p_src = xf @ w_src.T                                             # (N, Dacc)
    p_dst = xf @ w_dst.T                                             # (N, Dacc)

    # ---- Sort edges by destination row so each N tile's edges are contiguous.
    e0 = edge_all[0].astype(jnp.int32)          # destination (scatter) rows
    e1 = edge_all[1].astype(jnp.int32)
    order = jnp.argsort(e0)
    e0s = e0[order]
    e1s = e1[order]
    r_edge = embed_all[order] @ w_rel.T                              # (Et, Dacc)
    # bf16 edge stream (halves the dominant HBM read); f32 accumulation stays.
    edge_m = (p_src[e0s] + p_dst[e1s] + r_edge).astype(jnp.bfloat16)

    # ---- Tiling / padding (8,128)-aligned; large E tiles amortize overhead.
    tile_n = min(256, _round_up(N, 8))
    n_pad = _round_up(N, tile_n)
    tile_e = min(512, _round_up(e_total, 128))
    e_pad = _round_up(e_total, tile_e)
    n_tiles = n_pad // tile_n
    e_tiles = e_pad // tile_e

    edge_m_p = jnp.zeros((e_pad, d_acc), jnp.bfloat16).at[:e_total].set(edge_m)
    # Pad edges get destination row n_pad: matches no node of any tile.
    rows_p = jnp.full((1, e_pad), n_pad, jnp.int32).at[0, :e_total].set(e0s)

    # ---- Per-N-tile edge ranges -> flattened (n_tile, e_block) work list.
    n_range = jnp.arange(n_tiles, dtype=jnp.int32)
    tstart = jnp.searchsorted(e0s, n_range * tile_n, side='left').astype(jnp.int32)
    tend = jnp.searchsorted(e0s, (n_range + 1) * tile_n, side='left').astype(jnp.int32)
    eb_start = tstart // tile_e
    eb_end = (tend + tile_e - 1) // tile_e
    visits = jnp.maximum(eb_end - eb_start, 1)   # edge-less tiles still zero+finalize

    n_items = n_tiles + e_tiles                  # static upper bound on total visits
    off = jnp.concatenate(
        [jnp.zeros((1,), jnp.int32), jnp.cumsum(visits).astype(jnp.int32)])
    w_ids = jnp.arange(n_items, dtype=jnp.int32)
    nt_raw = jnp.searchsorted(off[1:], w_ids, side='right').astype(jnp.int32)
    valid = nt_raw < n_tiles
    nt = jnp.minimum(nt_raw, n_tiles - 1)
    j = jnp.clip(w_ids - off[nt], 0, visits[nt] - 1)   # padding items alias the
    eb = jnp.clip(eb_start[nt] + j, 0, e_tiles - 1)    # last real work item
    first_arr = (valid & (j == 0)).astype(jnp.int32)
    last_arr = (valid & (j == visits[nt] - 1)).astype(jnp.int32)
    valid_arr = valid.astype(jnp.int32)
    nt = nt.astype(jnp.int32)
    eb = eb.astype(jnp.int32)

    # ---- Small constant selector / mask inputs.
    col = jnp.arange(d_acc)
    head_of_col = jnp.where(col < d_total, col // nhid,
                            jnp.where(col < d_total + nheads,
                                      col - d_total, -1))
    sel = (head_of_col[None, :] == jnp.arange(hp)[:, None]).astype(jnp.float32)
    score_sel = jnp.zeros((d_acc, hp), jnp.float32)
    score_sel = score_sel.at[d_total + jnp.arange(nheads),
                             jnp.arange(nheads)].set(1.0)
    colmask = (col >= d_total).astype(jnp.float32)[None, :]           # (1, Dacc)

    kernel = functools.partial(_sp_gat_layer_kernel, alpha=float(alpha),
                               tile_n=tile_n)

    out = pl.pallas_call(
        kernel,
        out_shape=jax.ShapeDtypeStruct((n_pad, d_acc), jnp.bfloat16),
        grid_spec=pltpu.PrefetchScalarGridSpec(
            num_scalar_prefetch=5,
            grid=(n_items,),
            in_specs=[
                pl.BlockSpec((tile_e, d_acc),
                             lambda w, nt_r, eb_r, fi, la, va: (eb_r[w], 0)),
                pl.BlockSpec((1, tile_e),
                             lambda w, nt_r, eb_r, fi, la, va: (0, eb_r[w])),
                pl.BlockSpec((hp, d_acc),
                             lambda w, nt_r, eb_r, fi, la, va: (0, 0)),
                pl.BlockSpec((d_acc, hp),
                             lambda w, nt_r, eb_r, fi, la, va: (0, 0)),
                pl.BlockSpec((1, d_acc),
                             lambda w, nt_r, eb_r, fi, la, va: (0, 0)),
            ],
            out_specs=pl.BlockSpec(
                (tile_n, d_acc),
                lambda w, nt_r, eb_r, fi, la, va: (nt_r[w], 0)),
            scratch_shapes=[pltpu.VMEM((tile_n, d_acc), jnp.float32)],
        ),
        compiler_params=pltpu.CompilerParams(
            dimension_semantics=("arbitrary",),
            vmem_limit_bytes=48 * 1024 * 1024),
    )(nt, eb, first_arr, last_arr, valid_arr,
      edge_m_p, rows_p, sel, score_sel, colmask)

    return out                       # padded (n_pad, d_acc) bf16


# ----------------------------------------------------------------------------
# Parameter init (deterministic, xavier-style)
# ----------------------------------------------------------------------------

def _xavier_uniform(key, shape, gain=1.414):
    fan_out, fan_in = shape[0], shape[1]
    limit = gain * (6.0 / (fan_in + fan_out)) ** 0.5
    return jax.random.uniform(key, shape, jnp.float32, -limit, limit)


def init_spgat_params(key, nfeat, nhid, relation_dim, nheads):
    keys = jax.random.split(key, 2 * nheads + 3)
    att = []
    for h in range(nheads):
        a = _xavier_uniform(keys[2 * h], (nhid, 2 * nfeat + relation_dim))
        a2 = _xavier_uniform(keys[2 * h + 1], (1, nhid))
        att.append((a, a2))
    W = _xavier_uniform(keys[2 * nheads], (relation_dim, nheads * nhid))
    out_in = nhid * nheads
    out_d = nheads * nhid
    a_o = _xavier_uniform(keys[2 * nheads + 1], (out_d, 2 * out_in + out_d))
    a2_o = _xavier_uniform(keys[2 * nheads + 2], (1, out_d))
    return {"att": att, "W": W, "out_att": (a_o, a2_o)}


# ----------------------------------------------------------------------------
# SpGAT forward
# ----------------------------------------------------------------------------

def spgat_forward(params, entity_embeddings, relation_embed, edge_list,
                  edge_type, edge_embed, edge_list_nhop, edge_type_nhop,
                  *, alpha, nheads):
    del nheads  # number of heads comes from params["att"]
    num_nodes = entity_embeddings.shape[0]
    x = entity_embeddings

    edge_embed_nhop = (relation_embed[edge_type_nhop[:, 0]]
                       + relation_embed[edge_type_nhop[:, 1]])

    # All heads of the first layer in ONE fused pallas_call.  Output stays
    # padded bf16; the second layer zero-weights the padded columns.
    a_list = [a for (a, _) in params["att"]]
    a2_list = [a2 for (_, a2) in params["att"]]
    x = sp_graph_attention_layer(x, edge_list, edge_embed,
                                 edge_list_nhop, edge_embed_nhop,
                                 a_list, a2_list, alpha=alpha)
    # dropout_layer: identity in eval mode.

    # Tiny matmul: plain XLA dot (pallas_call fixed overhead exceeds compute).
    out_relation_1 = relation_embed.astype(jnp.float32) @ params["W"]

    edge_embed2 = out_relation_1[edge_type]
    edge_embed_nhop2 = (out_relation_1[edge_type_nhop[:, 0]]
                        + out_relation_1[edge_type_nhop[:, 1]])

    a_o, a2_o = params["out_att"]
    # Out layer (single head); F.elu of the reference is folded into the
    # kernel's finalize step (identical in eval mode).
    x = sp_graph_attention_layer(x, edge_list, edge_embed2,
                                 edge_list_nhop, edge_embed_nhop2,
                                 [a_o], [a2_o], alpha=alpha)

    d_out = a_o.shape[0]
    x = x[:num_nodes, :d_out].astype(jnp.float32)   # single slice at the end
    return x, out_relation_1


# ----------------------------------------------------------------------------
# Main
# ----------------------------------------------------------------------------

if __name__ == "__main__":
    key = jax.random.PRNGKey(0)

    num_nodes = 16
    nfeat = 16
    nhid = 8
    relation_dim = 8
    nheads = 2
    num_rel = 4
    E = 12       # 1-hop edges
    E2 = 4       # n-hop edges
    alpha = 0.2

    ks = jax.random.split(key, 8)
    entity_embeddings = jax.random.normal(ks[0], (num_nodes, nfeat), jnp.float32)
    relation_embed = jax.random.normal(ks[1], (num_rel, relation_dim), jnp.float32)
    edge_list = jax.random.randint(ks[2], (2, E), 0, num_nodes, jnp.int32)
    edge_type = jax.random.randint(ks[3], (E,), 0, num_rel, jnp.int32)
    edge_embed = relation_embed[edge_type]
    edge_list_nhop = jax.random.randint(ks[4], (2, E2), 0, num_nodes, jnp.int32)
    edge_type_nhop = jax.random.randint(ks[5], (E2, 2), 0, num_rel, jnp.int32)

    params = init_spgat_params(ks[6], nfeat, nhid, relation_dim, nheads)

    fwd = jax.jit(functools.partial(spgat_forward, alpha=alpha, nheads=nheads))
    x_out, out_rel = fwd(params, entity_embeddings, relation_embed, edge_list,
                         edge_type, edge_embed, edge_list_nhop, edge_type_nhop)

    jax.block_until_ready((x_out, out_rel))
    assert x_out.shape == (num_nodes, nheads * nhid)
    assert out_rel.shape == (num_rel, nheads * nhid)
    assert bool(jnp.all(jnp.isfinite(x_out)))
    print("KERNEL_OK")
</pallas_src>

<mosaic_0001>
module attributes {stable_mosaic.version = 11 : i64} {
  func.func @_sp_gat_layer_kernel(%arg0: i32, %arg1: memref<2xi32, #tpu.memory_space<smem>>, %arg2: memref<2xi32, #tpu.memory_space<smem>>, %arg3: memref<2xi32, #tpu.memory_space<smem>>, %arg4: memref<2xi32, #tpu.memory_space<smem>>, %arg5: memref<2xi32, #tpu.memory_space<smem>>, %arg6: memref<128x128xbf16, #tpu.memory_space<vmem>>, %arg7: memref<1x128xi32, #tpu.memory_space<vmem>>, %arg8: memref<8x128xf32, #tpu.memory_space<vmem>>, %arg9: memref<128x8xf32, #tpu.memory_space<vmem>>, %arg10: memref<1x128xf32, #tpu.memory_space<vmem>>, %arg11: memref<16x128xbf16, #tpu.memory_space<vmem>>, %arg12: memref<16x128xf32, #tpu.memory_space<vmem>>) attributes {dimension_semantics = [#tpu.dimension_semantics<arbitrary>], iteration_bounds = array<i64: 2>, scalar_prefetch = 5 : i64, scratch_operands = 1 : i64, tpu.core_type = #tpu.core_type<tc>, window_params = [{transform_indices = @transform_0, window_bounds = array<i64: 128, 128>}, {transform_indices = @transform_1, window_bounds = array<i64: 1, 128>}, {pipeline_mode = #tpu.pipeline_mode<synchronous>, transform_indices = @transform_2, window_bounds = array<i64: 8, 128>}, {pipeline_mode = #tpu.pipeline_mode<synchronous>, transform_indices = @transform_3, window_bounds = array<i64: 128, 8>}, {pipeline_mode = #tpu.pipeline_mode<synchronous>, transform_indices = @transform_4, window_bounds = array<i64: 1, 128>}, {transform_indices = @transform_5, window_bounds = array<i64: 16, 128>}]} {
    %0 = arith.index_cast %arg0 : i32 to index
    %1 = memref.load %arg3[%0] : memref<2xi32, #tpu.memory_space<smem>>
    %c0_i32 = arith.constant 0 : i32
    %2 = arith.cmpi ne, %1, %c0_i32 : i32
    %3 = arith.index_cast %arg0 : i32 to index
    %4 = memref.load %arg4[%3] : memref<2xi32, #tpu.memory_space<smem>>
    %c0_i32_0 = arith.constant 0 : i32
    %5 = arith.cmpi ne, %4, %c0_i32_0 : i32
    %6 = arith.index_cast %arg0 : i32 to index
    %7 = memref.load %arg5[%6] : memref<2xi32, #tpu.memory_space<smem>>
    %c0_i32_1 = arith.constant 0 : i32
    %8 = arith.cmpi ne, %7, %c0_i32_1 : i32
    %9 = arith.extui %2 : i1 to i32
    %c0_i32_2 = arith.constant 0 : i32
    %10 = arith.cmpi ne, %9, %c0_i32_2 : i32
    scf.if %10 {
      %cst = arith.constant 0.000000e+00 : f32
      %15 = vector.broadcast %cst : f32 to vector<16x128xf32>
      %c0 = arith.constant 0 : index
      %c0_5 = arith.constant 0 : index
      %16 = vector.load %arg12[%c0, %c0_5] : memref<16x128xf32, #tpu.memory_space<vmem>>, vector<16x128xf32>
      tpu.vector_store %arg12[%c0, %c0_5], %15 {strides = array<i32>} : memref<16x128xf32, #tpu.memory_space<vmem>>, vector<16x128xf32>,
    } else {
    }
    %11 = arith.extui %8 : i1 to i32
    %c0_i32_3 = arith.constant 0 : i32
    %12 = arith.cmpi ne, %11, %c0_i32_3 : i32
    scf.if %12 {
      %c0 = arith.constant 0 : index
      %c0_5 = arith.constant 0 : index
      %15 = vector.load %arg6[%c0, %c0_5] : memref<128x128xbf16, #tpu.memory_space<vmem>>, vector<128x128xbf16>
      %16 = arith.extf %15 : vector<128x128xbf16> to vector<128x128xf32>
      %c0_6 = arith.constant 0 : index
      %c0_7 = arith.constant 0 : index
      %17 = vector.load %arg9[%c0_6, %c0_7] : memref<128x8xf32, #tpu.memory_space<vmem>>, vector<128x8xf32>
      %cst = arith.constant dense<0.000000e+00> : vector<128x8xf32>
      %18 = tpu.matmul %16, %17, %cst {dimension_numbers = #tpu.dot_dimension_numbers<[1], [0], [0], [1], [0, 0, 1, 1], [], []>} : vector<128x128xf32>, vector<128x8xf32>, vector<128x8xf32> -> vector<128x8xf32>
      %cst_8 = arith.constant 0.000000e+00 : f32
      %19 = vector.broadcast %cst_8 : f32 to vector<128x8xf32>
      %20 = arith.cmpf ogt, %18, %19 : vector<128x8xf32>
      %cst_9 = arith.constant 2.000000e-01 : f32
      %21 = vector.broadcast %cst_9 : f32 to vector<128x8xf32>
      %22 = arith.mulf %21, %18 : vector<128x8xf32>
      %23 = arith.select %20, %18, %22 : vector<128x8xi1>, vector<128x8xf32>
      %cst_10 = arith.constant 0.000000e+00 : f32
      %24 = vector.broadcast %cst_10 : f32 to vector<128x8xf32>
      %25 = arith.subf %24, %23 : vector<128x8xf32>
      %26 = math.exp %25 : vector<128x8xf32>
      %c0_11 = arith.constant 0 : index
      %c0_12 = arith.constant 0 : index
      %27 = vector.load %arg8[%c0_11, %c0_12] : memref<8x128xf32, #tpu.memory_space<vmem>>, vector<8x128xf32>
      %cst_13 = arith.constant dense<0.000000e+00> : vector<128x128xf32>
      %28 = tpu.matmul %26, %27, %cst_13 {dimension_numbers = #tpu.dot_dimension_numbers<[1], [0], [0], [1], [0, 0, 1, 1], [], []>} : vector<128x8xf32>, vector<8x128xf32>, vector<128x128xf32> -> vector<128x128xf32>
      %c0_14 = arith.constant 0 : index
      %c0_15 = arith.constant 0 : index
      %29 = vector.load %arg10[%c0_14, %c0_15] : memref<1x128xf32, #tpu.memory_space<vmem>>, vector<1x128xf32>
      %cst_16 = arith.constant 1.000000e+00 : f32
      %30 = vector.broadcast %cst_16 : f32 to vector<1x128xf32>
      %31 = arith.subf %30, %29 : vector<1x128xf32>
      %32 = vector.broadcast %31 : vector<1x128xf32> to vector<128x128xf32>
      %33 = arith.mulf %16, %32 : vector<128x128xf32>
      %34 = vector.broadcast %29 : vector<1x128xf32> to vector<128x128xf32>
      %35 = arith.addf %33, %34 : vector<128x128xf32>
      %36 = arith.mulf %28, %35 : vector<128x128xf32>
      %37 = arith.truncf %36 : vector<128x128xf32> to vector<128x128xbf16>
      %38 = arith.index_cast %arg0 : i32 to index
      %39 = memref.load %arg1[%38] : memref<2xi32, #tpu.memory_space<smem>>
      %c16_i32 = arith.constant 16 : i32
      %40 = arith.muli %39, %c16_i32 : i32
      %c0_17 = arith.constant 0 : index
      %c0_18 = arith.constant 0 : index
      %41 = vector.load %arg7[%c0_17, %c0_18] : memref<1x128xi32, #tpu.memory_space<vmem>>, vector<1x128xi32>
      %42 = vector.broadcast %40 : i32 to vector<1x128xi32>
      %43 = arith.subi %41, %42 : vector<1x128xi32>
      %44 = tpu.iota {dimensions = array<i32: 0>} : vector<16x128xi32>
      %45 = vector.broadcast %43 : vector<1x128xi32> to vector<16x128xi32>
      %46 = arith.cmpi eq, %44, %45 : vector<16x128xi32>
      %47 = arith.extui %46 : vector<16x128xi1> to vector<16x128xi32>
      %48 = arith.sitofp %47 : vector<16x128xi32> to vector<16x128xf32>
      %49 = arith.truncf %48 : vector<16x128xf32> to vector<16x128xbf16>
      %c0_19 = arith.constant 0 : index
      %c0_20 = arith.constant 0 : index
      %50 = vector.load %arg12[%c0_19, %c0_20] : memref<16x128xf32, #tpu.memory_space<vmem>>, vector<16x128xf32>
      %cst_21 = arith.constant dense<0.000000e+00> : vector<16x128xf32>
      %51 = tpu.matmul %49, %37, %cst_21 {dimension_numbers = #tpu.dot_dimension_numbers<[1], [0], [0], [1], [0, 0, 1, 1], [], []>} : vector<16x128xbf16>, vector<128x128xbf16>, vector<16x128xf32> -> vector<16x128xf32>
      %52 = arith.addf %50, %51 : vector<16x128xf32>
      %c0_22 = arith.constant 0 : index
      %c0_23 = arith.constant 0 : index
      %53 = vector.load %arg12[%c0_22, %c0_23] : memref<16x128xf32, #tpu.memory_space<vmem>>, vector<16x128xf32>
      tpu.vector_store %arg12[%c0_22, %c0_23], %52 {strides = array<i32>} : memref<16x128xf32, #tpu.memory_space<vmem>>, vector<16x128xf32>,
    } else {
    }
    %13 = arith.extui %5 : i1 to i32
    %c0_i32_4 = arith.constant 0 : i32
    %14 = arith.cmpi ne, %13, %c0_i32_4 : i32
    scf.if %14 {
      %c0 = arith.constant 0 : index
      %c0_5 = arith.constant 0 : index
      %15 = vector.load %arg12[%c0, %c0_5] : memref<16x128xf32, #tpu.memory_space<vmem>>, vector<16x128xf32>
      %c0_6 = arith.constant 0 : index
      %c0_7 = arith.constant 0 : index
      %16 = vector.load %arg9[%c0_6, %c0_7] : memref<128x8xf32, #tpu.memory_space<vmem>>, vector<128x8xf32>
      %cst = arith.constant dense<0.000000e+00> : vector<16x8xf32>
      %17 = tpu.matmul %15, %16, %cst {dimension_numbers = #tpu.dot_dimension_numbers<[1], [0], [0], [1], [0, 0, 1, 1], [], []>} : vector<16x128xf32>, vector<128x8xf32>, vector<16x8xf32> -> vector<16x8xf32>
      %cst_8 = arith.constant 0.000000e+00 : f32
      %18 = vector.broadcast %cst_8 : f32 to vector<16x8xf32>
      %19 = arith.cmpf oeq, %17, %18 : vector<16x8xf32>
      %cst_9 = arith.constant 9.99999996E-13 : f32
      %20 = vector.broadcast %cst_9 : f32 to vector<16x8xf32>
      %21 = arith.select %19, %20, %17 : vector<16x8xi1>, vector<16x8xf32>
      %22 = tpu.reciprocal %21 {approx = true} : vector<16x8xf32> -> vector<16x8xf32>
      %c0_10 = arith.constant 0 : index
      %c0_11 = arith.constant 0 : index
      %23 = vector.load %arg8[%c0_10, %c0_11] : memref<8x128xf32, #tpu.memory_space<vmem>>, vector<8x128xf32>
      %cst_12 = arith.constant dense<0.000000e+00> : vector<16x128xf32>
      %24 = tpu.matmul %22, %23, %cst_12 {dimension_numbers = #tpu.dot_dimension_numbers<[1], [0], [0], [1], [0, 0, 1, 1], [], []>} : vector<16x8xf32>, vector<8x128xf32>, vector<16x128xf32> -> vector<16x128xf32>
      %25 = arith.mulf %15, %24 : vector<16x128xf32>
      %cst_13 = arith.constant 0.000000e+00 : f32
      %26 = vector.broadcast %cst_13 : f32 to vector<16x128xf32>
      %27 = arith.cmpf ogt, %25, %26 : vector<16x128xf32>
      %cst_14 = arith.constant 0.000000e+00 : f32
      %28 = vector.broadcast %cst_14 : f32 to vector<16x128xf32>
      %29 = arith.minimumf %25, %28 : vector<16x128xf32>
      %30 = math.exp %29 : vector<16x128xf32>
      %cst_15 = arith.constant 1.000000e+00 : f32
      %31 = vector.broadcast %cst_15 : f32 to vector<16x128xf32>
      %32 = arith.subf %30, %31 : vector<16x128xf32>
      %33 = arith.select %27, %25, %32 : vector<16x128xi1>, vector<16x128xf32>
      %34 = arith.truncf %33 : vector<16x128xf32> to vector<16x128xbf16>
      %c0_16 = arith.constant 0 : index
      %c0_17 = arith.constant 0 : index
      %35 = vector.load %arg11[%c0_16, %c0_17] : memref<16x128xbf16, #tpu.memory_space<vmem>>, vector<16x128xbf16>
      tpu.vector_store %arg11[%c0_16, %c0_17], %34 {strides = array<i32>} : memref<16x128xbf16, #tpu.memory_space<vmem>>, vector<16x128xbf16>,
    } else {
    }
    return
  }
  func.func @transform_0(%arg0: i32, %arg1: memref<2xi32, #tpu.memory_space<smem>>, %arg2: memref<2xi32, #tpu.memory_space<smem>>, %arg3: memref<2xi32, #tpu.memory_space<smem>>, %arg4: memref<2xi32, #tpu.memory_space<smem>>, %arg5: memref<2xi32, #tpu.memory_space<smem>>) -> (i32, i32) {
    %0 = arith.index_cast %arg0 : i32 to index
    %1 = memref.load %arg2[%0] : memref<2xi32, #tpu.memory_space<smem>>
    %c0_i32 = arith.constant 0 : i32
    %c0_i32_0 = arith.constant 0 : i32
    return %1, %c0_i32 : i32, i32
  }
  func.func @transform_1(%arg0: i32, %arg1: memref<2xi32, #tpu.memory_space<smem>>, %arg2: memref<2xi32, #tpu.memory_space<smem>>, %arg3: memref<2xi32, #tpu.memory_space<smem>>, %arg4: memref<2xi32, #tpu.memory_space<smem>>, %arg5: memref<2xi32, #tpu.memory_space<smem>>) -> (i32, i32) {
    %0 = arith.index_cast %arg0 : i32 to index
    %1 = memref.load %arg2[%0] : memref<2xi32, #tpu.memory_space<smem>>
    %c0_i32 = arith.constant 0 : i32
    %c0_i32_0 = arith.constant 0 : i32
    return %c0_i32, %1 : i32, i32
  }
  func.func @transform_2(%arg0: i32, %arg1: memref<2xi32, #tpu.memory_space<smem>>, %arg2: memref<2xi32, #tpu.memory_space<smem>>, %arg3: memref<2xi32, #tpu.memory_space<smem>>, %arg4: memref<2xi32, #tpu.memory_space<smem>>, %arg5: memref<2xi32, #tpu.memory_space<smem>>) -> (i32, i32) {
    %c0_i32 = arith.constant 0 : i32
    %c0_i32_0 = arith.constant 0 : i32
    %c0_i32_1 = arith.constant 0 : i32
    return %c0_i32, %c0_i32_0 : i32, i32
  }
  func.func @transform_3(%arg0: i32, %arg1: memref<2xi32, #tpu.memory_space<smem>>, %arg2: memref<2xi32, #tpu.memory_space<smem>>, %arg3: memref<2xi32, #tpu.memory_space<smem>>, %arg4: memref<2xi32, #tpu.memory_space<smem>>, %arg5: memref<2xi32, #tpu.memory_space<smem>>) -> (i32, i32) {
    %c0_i32 = arith.constant 0 : i32
    %c0_i32_0 = arith.constant 0 : i32
    %c0_i32_1 = arith.constant 0 : i32
    return %c0_i32, %c0_i32_0 : i32, i32
  }
  func.func @transform_4(%arg0: i32, %arg1: memref<2xi32, #tpu.memory_space<smem>>, %arg2: memref<2xi32, #tpu.memory_space<smem>>, %arg3: memref<2xi32, #tpu.memory_space<smem>>, %arg4: memref<2xi32, #tpu.memory_space<smem>>, %arg5: memref<2xi32, #tpu.memory_space<smem>>) -> (i32, i32) {
    %c0_i32 = arith.constant 0 : i32
    %c0_i32_0 = arith.constant 0 : i32
    %c0_i32_1 = arith.constant 0 : i32
    return %c0_i32, %c0_i32_0 : i32, i32
  }
  func.func @transform_5(%arg0: i32, %arg1: memref<2xi32, #tpu.memory_space<smem>>, %arg2: memref<2xi32, #tpu.memory_space<smem>>, %arg3: memref<2xi32, #tpu.memory_space<smem>>, %arg4: memref<2xi32, #tpu.memory_space<smem>>, %arg5: memref<2xi32, #tpu.memory_space<smem>>) -> (i32, i32) {
    %0 = arith.index_cast %arg0 : i32 to index
    %1 = memref.load %arg1[%0] : memref<2xi32, #tpu.memory_space<smem>>
    %c0_i32 = arith.constant 0 : i32
    %c0_i32_0 = arith.constant 0 : i32
    return %1, %c0_i32 : i32, i32
  }
}

module attributes {stable_mosaic.version = 11 : i64} {
  func.func @_sp_gat_layer_kernel(%arg0: i32, %arg1: memref<2xi32, #tpu.memory_space<smem>>, %arg2: memref<2xi32, #tpu.memory_space<smem>>, %arg3: memref<2xi32, #tpu.memory_space<smem>>, %arg4: memref<2xi32, #tpu.memory_space<smem>>, %arg5: memref<2xi32, #tpu.memory_space<smem>>, %arg6: memref<128x128xbf16, #tpu.memory_space<vmem>>, %arg7: memref<1x128xi32, #tpu.memory_space<vmem>>, %arg8: memref<8x128xf32, #tpu.memory_space<vmem>>, %arg9: memref<128x8xf32, #tpu.memory_space<vmem>>, %arg10: memref<1x128xf32, #tpu.memory_space<vmem>>, %arg11: memref<16x128xbf16, #tpu.memory_space<vmem>>, %arg12: memref<16x128xf32, #tpu.memory_space<vmem>>) attributes {dimension_semantics = [#tpu.dimension_semantics<arbitrary>], iteration_bounds = array<i64: 2>, scalar_prefetch = 5 : i64, scratch_operands = 1 : i64, tpu.core_type = #tpu.core_type<tc>, window_params = [{transform_indices = @transform_0, window_bounds = array<i64: 128, 128>}, {transform_indices = @transform_1, window_bounds = array<i64: 1, 128>}, {pipeline_mode = #tpu.pipeline_mode<synchronous>, transform_indices = @transform_2, window_bounds = array<i64: 8, 128>}, {pipeline_mode = #tpu.pipeline_mode<synchronous>, transform_indices = @transform_3, window_bounds = array<i64: 128, 8>}, {pipeline_mode = #tpu.pipeline_mode<synchronous>, transform_indices = @transform_4, window_bounds = array<i64: 1, 128>}, {transform_indices = @transform_5, window_bounds = array<i64: 16, 128>}]} {
    %0 = arith.index_cast %arg0 : i32 to index
    %1 = memref.load %arg3[%0] : memref<2xi32, #tpu.memory_space<smem>>
    %c0_i32 = arith.constant 0 : i32
    %2 = arith.cmpi ne, %1, %c0_i32 : i32
    %3 = arith.index_cast %arg0 : i32 to index
    %4 = memref.load %arg4[%3] : memref<2xi32, #tpu.memory_space<smem>>
    %c0_i32_0 = arith.constant 0 : i32
    %5 = arith.cmpi ne, %4, %c0_i32_0 : i32
    %6 = arith.index_cast %arg0 : i32 to index
    %7 = memref.load %arg5[%6] : memref<2xi32, #tpu.memory_space<smem>>
    %c0_i32_1 = arith.constant 0 : i32
    %8 = arith.cmpi ne, %7, %c0_i32_1 : i32
    %9 = arith.extui %2 : i1 to i32
    %c0_i32_2 = arith.constant 0 : i32
    %10 = arith.cmpi ne, %9, %c0_i32_2 : i32
    scf.if %10 {
      %cst = arith.constant 0.000000e+00 : f32
      %15 = vector.broadcast %cst : f32 to vector<16x128xf32>
      %c0 = arith.constant 0 : index
      %c0_5 = arith.constant 0 : index
      %16 = vector.load %arg12[%c0, %c0_5] : memref<16x128xf32, #tpu.memory_space<vmem>>, vector<16x128xf32>
      tpu.vector_store %arg12[%c0, %c0_5], %15 {strides = array<i32>} : memref<16x128xf32, #tpu.memory_space<vmem>>, vector<16x128xf32>,
    } else {
    }
    %11 = arith.extui %8 : i1 to i32
    %c0_i32_3 = arith.constant 0 : i32
    %12 = arith.cmpi ne, %11, %c0_i32_3 : i32
    scf.if %12 {
      %c0 = arith.constant 0 : index
      %c0_5 = arith.constant 0 : index
      %15 = vector.load %arg6[%c0, %c0_5] : memref<128x128xbf16, #tpu.memory_space<vmem>>, vector<128x128xbf16>
      %16 = arith.extf %15 : vector<128x128xbf16> to vector<128x128xf32>
      %c0_6 = arith.constant 0 : index
      %c0_7 = arith.constant 0 : index
      %17 = vector.load %arg9[%c0_6, %c0_7] : memref<128x8xf32, #tpu.memory_space<vmem>>, vector<128x8xf32>
      %cst = arith.constant dense<0.000000e+00> : vector<128x8xf32>
      %18 = tpu.matmul %16, %17, %cst {dimension_numbers = #tpu.dot_dimension_numbers<[1], [0], [0], [1], [0, 0, 1, 1], [], []>} : vector<128x128xf32>, vector<128x8xf32>, vector<128x8xf32> -> vector<128x8xf32>
      %cst_8 = arith.constant 0.000000e+00 : f32
      %19 = vector.broadcast %cst_8 : f32 to vector<128x8xf32>
      %20 = arith.cmpf ogt, %18, %19 : vector<128x8xf32>
      %cst_9 = arith.constant 2.000000e-01 : f32
      %21 = vector.broadcast %cst_9 : f32 to vector<128x8xf32>
      %22 = arith.mulf %21, %18 : vector<128x8xf32>
      %23 = arith.select %20, %18, %22 : vector<128x8xi1>, vector<128x8xf32>
      %cst_10 = arith.constant 0.000000e+00 : f32
      %24 = vector.broadcast %cst_10 : f32 to vector<128x8xf32>
      %25 = arith.subf %24, %23 : vector<128x8xf32>
      %26 = math.exp %25 : vector<128x8xf32>
      %c0_11 = arith.constant 0 : index
      %c0_12 = arith.constant 0 : index
      %27 = vector.load %arg8[%c0_11, %c0_12] : memref<8x128xf32, #tpu.memory_space<vmem>>, vector<8x128xf32>
      %cst_13 = arith.constant dense<0.000000e+00> : vector<128x128xf32>
      %28 = tpu.matmul %26, %27, %cst_13 {dimension_numbers = #tpu.dot_dimension_numbers<[1], [0], [0], [1], [0, 0, 1, 1], [], []>} : vector<128x8xf32>, vector<8x128xf32>, vector<128x128xf32> -> vector<128x128xf32>
      %c0_14 = arith.constant 0 : index
      %c0_15 = arith.constant 0 : index
      %29 = vector.load %arg10[%c0_14, %c0_15] : memref<1x128xf32, #tpu.memory_space<vmem>>, vector<1x128xf32>
      %cst_16 = arith.constant 1.000000e+00 : f32
      %30 = vector.broadcast %cst_16 : f32 to vector<1x128xf32>
      %31 = arith.subf %30, %29 : vector<1x128xf32>
      %32 = vector.broadcast %31 : vector<1x128xf32> to vector<128x128xf32>
      %33 = arith.mulf %16, %32 : vector<128x128xf32>
      %34 = vector.broadcast %29 : vector<1x128xf32> to vector<128x128xf32>
      %35 = arith.addf %33, %34 : vector<128x128xf32>
      %36 = arith.mulf %28, %35 : vector<128x128xf32>
      %37 = arith.truncf %36 : vector<128x128xf32> to vector<128x128xbf16>
      %38 = arith.index_cast %arg0 : i32 to index
      %39 = memref.load %arg1[%38] : memref<2xi32, #tpu.memory_space<smem>>
      %c16_i32 = arith.constant 16 : i32
      %40 = arith.muli %39, %c16_i32 : i32
      %c0_17 = arith.constant 0 : index
      %c0_18 = arith.constant 0 : index
      %41 = vector.load %arg7[%c0_17, %c0_18] : memref<1x128xi32, #tpu.memory_space<vmem>>, vector<1x128xi32>
      %42 = vector.broadcast %40 : i32 to vector<1x128xi32>
      %43 = arith.subi %41, %42 : vector<1x128xi32>
      %44 = tpu.iota {dimensions = array<i32: 0>} : vector<16x128xi32>
      %45 = vector.broadcast %43 : vector<1x128xi32> to vector<16x128xi32>
      %46 = arith.cmpi eq, %44, %45 : vector<16x128xi32>
      %47 = arith.extui %46 : vector<16x128xi1> to vector<16x128xi32>
      %48 = arith.sitofp %47 : vector<16x128xi32> to vector<16x128xf32>
      %49 = arith.truncf %48 : vector<16x128xf32> to vector<16x128xbf16>
      %c0_19 = arith.constant 0 : index
      %c0_20 = arith.constant 0 : index
      %50 = vector.load %arg12[%c0_19, %c0_20] : memref<16x128xf32, #tpu.memory_space<vmem>>, vector<16x128xf32>
      %cst_21 = arith.constant dense<0.000000e+00> : vector<16x128xf32>
      %51 = tpu.matmul %49, %37, %cst_21 {dimension_numbers = #tpu.dot_dimension_numbers<[1], [0], [0], [1], [0, 0, 1, 1], [], []>} : vector<16x128xbf16>, vector<128x128xbf16>, vector<16x128xf32> -> vector<16x128xf32>
      %52 = arith.addf %50, %51 : vector<16x128xf32>
      %c0_22 = arith.constant 0 : index
      %c0_23 = arith.constant 0 : index
      %53 = vector.load %arg12[%c0_22, %c0_23] : memref<16x128xf32, #tpu.memory_space<vmem>>, vector<16x128xf32>
      tpu.vector_store %arg12[%c0_22, %c0_23], %52 {strides = array<i32>} : memref<16x128xf32, #tpu.memory_space<vmem>>, vector<16x128xf32>,
    } else {
    }
    %13 = arith.extui %5 : i1 to i32
    %c0_i32_4 = arith.constant 0 : i32
    %14 = arith.cmpi ne, %13, %c0_i32_4 : i32
    scf.if %14 {
      %c0 = arith.constant 0 : index
      %c0_5 = arith.constant 0 : index
      %15 = vector.load %arg12[%c0, %c0_5] : memref<16x128xf32, #tpu.memory_space<vmem>>, vector<16x128xf32>
      %c0_6 = arith.constant 0 : index
      %c0_7 = arith.constant 0 : index
      %16 = vector.load %arg9[%c0_6, %c0_7] : memref<128x8xf32, #tpu.memory_space<vmem>>, vector<128x8xf32>
      %cst = arith.constant dense<0.000000e+00> : vector<16x8xf32>
      %17 = tpu.matmul %15, %16, %cst {dimension_numbers = #tpu.dot_dimension_numbers<[1], [0], [0], [1], [0, 0, 1, 1], [], []>} : vector<16x128xf32>, vector<128x8xf32>, vector<16x8xf32> -> vector<16x8xf32>
      %cst_8 = arith.constant 0.000000e+00 : f32
      %18 = vector.broadcast %cst_8 : f32 to vector<16x8xf32>
      %19 = arith.cmpf oeq, %17, %18 : vector<16x8xf32>
      %cst_9 = arith.constant 9.99999996E-13 : f32
      %20 = vector.broadcast %cst_9 : f32 to vector<16x8xf32>
      %21 = arith.select %19, %20, %17 : vector<16x8xi1>, vector<16x8xf32>
      %22 = tpu.reciprocal %21 {approx = true} : vector<16x8xf32> -> vector<16x8xf32>
      %c0_10 = arith.constant 0 : index
      %c0_11 = arith.constant 0 : index
      %23 = vector.load %arg8[%c0_10, %c0_11] : memref<8x128xf32, #tpu.memory_space<vmem>>, vector<8x128xf32>
      %cst_12 = arith.constant dense<0.000000e+00> : vector<16x128xf32>
      %24 = tpu.matmul %22, %23, %cst_12 {dimension_numbers = #tpu.dot_dimension_numbers<[1], [0], [0], [1], [0, 0, 1, 1], [], []>} : vector<16x8xf32>, vector<8x128xf32>, vector<16x128xf32> -> vector<16x128xf32>
      %25 = arith.mulf %15, %24 : vector<16x128xf32>
      %cst_13 = arith.constant 0.000000e+00 : f32
      %26 = vector.broadcast %cst_13 : f32 to vector<16x128xf32>
      %27 = arith.cmpf ogt, %25, %26 : vector<16x128xf32>
      %cst_14 = arith.constant 0.000000e+00 : f32
      %28 = vector.broadcast %cst_14 : f32 to vector<16x128xf32>
      %29 = arith.minimumf %25, %28 : vector<16x128xf32>
      %30 = math.exp %29 : vector<16x128xf32>
      %cst_15 = arith.constant 1.000000e+00 : f32
      %31 = vector.broadcast %cst_15 : f32 to vector<16x128xf32>
      %32 = arith.subf %30, %31 : vector<16x128xf32>
      %33 = arith.select %27, %25, %32 : vector<16x128xi1>, vector<16x128xf32>
      %34 = arith.truncf %33 : vector<16x128xf32> to vector<16x128xbf16>
      %c0_16 = arith.constant 0 : index
      %c0_17 = arith.constant 0 : index
      %35 = vector.load %arg11[%c0_16, %c0_17] : memref<16x128xbf16, #tpu.memory_space<vmem>>, vector<16x128xbf16>
      tpu.vector_store %arg11[%c0_16, %c0_17], %34 {strides = array<i32>} : memref<16x128xbf16, #tpu.memory_space<vmem>>, vector<16x128xbf16>,
    } else {
    }
    return
  }
  func.func @transform_0(%arg0: i32, %arg1: memref<2xi32, #tpu.memory_space<smem>>, %arg2: memref<2xi32, #tpu.memory_space<smem>>, %arg3: memref<2xi32, #tpu.memory_space<smem>>, %arg4: memref<2xi32, #tpu.memory_space<smem>>, %arg5: memref<2xi32, #tpu.memory_space<smem>>) -> (i32, i32) {
    %0 = arith.index_cast %arg0 : i32 to index
    %1 = memref.load %arg2[%0] : memref<2xi32, #tpu.memory_space<smem>>
    %c0_i32 = arith.constant 0 : i32
    %c0_i32_0 = arith.constant 0 : i32
    return %1, %c0_i32 : i32, i32
  }
  func.func @transform_1(%arg0: i32, %arg1: memref<2xi32, #tpu.memory_space<smem>>, %arg2: memref<2xi32, #tpu.memory_space<smem>>, %arg3: memref<2xi32, #tpu.memory_space<smem>>, %arg4: memref<2xi32, #tpu.memory_space<smem>>, %arg5: memref<2xi32, #tpu.memory_space<smem>>) -> (i32, i32) {
    %0 = arith.index_cast %arg0 : i32 to index
    %1 = memref.load %arg2[%0] : memref<2xi32, #tpu.memory_space<smem>>
    %c0_i32 = arith.constant 0 : i32
    %c0_i32_0 = arith.constant 0 : i32
    return %c0_i32, %1 : i32, i32
  }
  func.func @transform_2(%arg0: i32, %arg1: memref<2xi32, #tpu.memory_space<smem>>, %arg2: memref<2xi32, #tpu.memory_space<smem>>, %arg3: memref<2xi32, #tpu.memory_space<smem>>, %arg4: memref<2xi32, #tpu.memory_space<smem>>, %arg5: memref<2xi32, #tpu.memory_space<smem>>) -> (i32, i32) {
    %c0_i32 = arith.constant 0 : i32
    %c0_i32_0 = arith.constant 0 : i32
    %c0_i32_1 = arith.constant 0 : i32
    return %c0_i32, %c0_i32_0 : i32, i32
  }
  func.func @transform_3(%arg0: i32, %arg1: memref<2xi32, #tpu.memory_space<smem>>, %arg2: memref<2xi32, #tpu.memory_space<smem>>, %arg3: memref<2xi32, #tpu.memory_space<smem>>, %arg4: memref<2xi32, #tpu.memory_space<smem>>, %arg5: memref<2xi32, #tpu.memory_space<smem>>) -> (i32, i32) {
    %c0_i32 = arith.constant 0 : i32
    %c0_i32_0 = arith.constant 0 : i32
    %c0_i32_1 = arith.constant 0 : i32
    return %c0_i32, %c0_i32_0 : i32, i32
  }
  func.func @transform_4(%arg0: i32, %arg1: memref<2xi32, #tpu.memory_space<smem>>, %arg2: memref<2xi32, #tpu.memory_space<smem>>, %arg3: memref<2xi32, #tpu.memory_space<smem>>, %arg4: memref<2xi32, #tpu.memory_space<smem>>, %arg5: memref<2xi32, #tpu.memory_space<smem>>) -> (i32, i32) {
    %c0_i32 = arith.constant 0 : i32
    %c0_i32_0 = arith.constant 0 : i32
    %c0_i32_1 = arith.constant 0 : i32
    return %c0_i32, %c0_i32_0 : i32, i32
  }
  func.func @transform_5(%arg0: i32, %arg1: memref<2xi32, #tpu.memory_space<smem>>, %arg2: memref<2xi32, #tpu.memory_space<smem>>, %arg3: memref<2xi32, #tpu.memory_space<smem>>, %arg4: memref<2xi32, #tpu.memory_space<smem>>, %arg5: memref<2xi32, #tpu.memory_space<smem>>) -> (i32, i32) {
    %0 = arith.index_cast %arg0 : i32 to index
    %1 = memref.load %arg1[%0] : memref<2xi32, #tpu.memory_space<smem>>
    %c0_i32 = arith.constant 0 : i32
    %c0_i32_0 = arith.constant 0 : i32
    return %1, %c0_i32 : i32, i32
  }
}

</mosaic_0001>

<bundles_post_ra>
// kernel: spgat_forward.3
= control target key start
LH: loop header
LB: loop body
LE: loop exit
PB: predicated region body
PF: predicated region fallthrough
CT: control target
= control target key end

     0   :  { %s2106_s0 = inlined_call_operand.vmem [shape: s32[2], index: 0, kind: input, shape index: {}]   ;;  %s2107_s5 = inlined_call_operand.vmem [shape: bf16[128,128], index: 5, kind: input, shape index: {}]   ;;  %s2108_s6 = inlined_call_operand.vmem [shape: s32[1,128], index: 6, kind: input, shape index: {}]   ;;  %s2109_s7 = inlined_call_operand.vmem [shape: f32[8,128], index: 7, kind: input, shape index: {}]   ;;  %s2110_s8 = inlined_call_operand.vmem [shape: f32[128,8], index: 8, kind: input, shape index: {}]   ;;  %s2111_s9 = inlined_call_operand.vmem [shape: f32[1,128], index: 9, kind: input, shape index: {}]   ;;  %s2112_s10 = inlined_call_operand.vmem [shape: bf16[16,128], index: 10, kind: output, shape index: {}]   ;;  %s2113_s1 = inlined_call_operand.vmem [shape: s32[2], index: 1, kind: input, shape index: {}]   ;;  %s2114_s2 = inlined_call_operand.vmem [shape: s32[2], index: 2, kind: input, shape index: {}]   ;;  %s2115_s3 = inlined_call_operand.vmem [shape: s32[2], index: 3, kind: input, shape index: {}]   ;;  %s2116_s4 = inlined_call_operand.vmem [shape: s32[2], index: 4, kind: input, shape index: {}]  }
   0x1   :  { %s15_s15 = sshll.u32 %s2106_s0, 4  ;;  %s19_s18 = sshll.u32 %s2113_s1, 4  ;;  %s16_s15 = int_to_ptr.vmem [resolvable:$true] %s15_s15  ;;  %s20_s18 = int_to_ptr.vmem [resolvable:$true] %s19_s18 }
   0x2   :  { %s1629_s19 = scalar_lea.vmem %s16_s15, 16  ;;  %p1634_p1 = scmp.lt.s32.totalorder %s16_s15, %s16_s15 }
   0x3   :  { %p1630_p0 = scmp.ne.s32.totalorder %s16_s15, %s1629_s19  ;;  %p1635_p2 = scmp.lt.s32.totalorder %s1629_s19, %s1629_s19 }
   0x5   :  { %p1636_p3 = por %p1635_p2, %p1634_p1 }
   0x7   :  { %p1637_p4 = pnand %p1636_p3, %p1630_p0 }
   0x9   :  { %1640 = shalt.err (!%p1637_p4)  }
   0xa   :  { %s1699_s20 = smov [#allocation4]   ;;  %s1641_s21 = scalar_lea.vmem %s20_s18, 16 }
   0xb   :  { %18 = dma.vmem_to_smem %s16_s15, 16, %s1699_s20, [#allocation3] }
   0xc   :  { %p1642_p5 = scmp.ne.s32.totalorder %s20_s18, %s1641_s21  ;;  %p1646_p6 = scmp.lt.s32.totalorder %s20_s18, %s20_s18 }
   0xd   :  { %p1647_p7 = scmp.lt.s32.totalorder %s1641_s21, %s1641_s21 }
   0xf   :  { %p1648_p8 = por %p1647_p7, %p1646_p6 }
  0x11   :  { %p1649_p9 = pnand %p1648_p8, %p1642_p5 }
  0x13   :  { %1652 = shalt.err (!%p1649_p9)  }
  0x14   :  { %s1700_s0 = smov [#allocation5]   ;;  %s23_s23 = sshll.u32 %s2114_s2, 4  ;;  %s24_s23 = int_to_ptr.vmem [resolvable:$true] %s23_s23 }
  0x15   :  { %22 = dma.vmem_to_smem %s20_s18, 16, %s1700_s0, [#allocation3] }
  0x16   :  { %s27_s26 = sshll.u32 %s2115_s3, 4  ;;  %s1653_s27 = scalar_lea.vmem %s24_s23, 16  ;;  %s28_s26 = int_to_ptr.vmem [resolvable:$true] %s27_s26 }
  0x17   :  { %p1654_p10 = scmp.ne.s32.totalorder %s24_s23, %s1653_s27  ;;  %p1658_p11 = scmp.lt.s32.totalorder %s24_s23, %s24_s23 }
  0x18   :  { %p1659_p12 = scmp.lt.s32.totalorder %s1653_s27, %s1653_s27 }
  0x1a   :  { %p1660_p13 = por %p1659_p12, %p1658_p11 }
  0x1c   :  { %p1661_p0 = pnand %p1660_p13, %p1654_p10 }
  0x1e   :  { %1664 = shalt.err (!%p1661_p0)  }
  0x1f   :  { %s1701_s28 = smov [#allocation6]   ;;  %s1665_s29 = scalar_lea.vmem %s28_s26, 16 }
  0x20   :  { %26 = dma.vmem_to_smem %s24_s23, 16, %s1701_s28, [#allocation3] }
  0x21   :  { %p1666_p1 = scmp.ne.s32.totalorder %s28_s26, %s1665_s29  ;;  %p1670_p2 = scmp.lt.s32.totalorder %s28_s26, %s28_s26 }
  0x22   :  { %p1671_p3 = scmp.lt.s32.totalorder %s1665_s29, %s1665_s29 }
  0x24   :  { %p1672_p4 = por %p1671_p3, %p1670_p2 }
  0x26   :  { %p1673_p5 = pnand %p1672_p4, %p1666_p1 }
  0x28   :  { %1676 = shalt.err (!%p1673_p5)  }
  0x29   :  { %s1702_s2 = smov [#allocation7]   ;;  %s31_s11 = sshll.u32 %s2116_s4, 4  ;;  %s32_s11 = int_to_ptr.vmem [resolvable:$true] %s31_s11 }
  0x2a   :  { %30 = dma.vmem_to_smem %s28_s26, 16, %s1702_s2, [#allocation3] }
  0x2b   :  { %s1677_s12 = scalar_lea.vmem %s32_s11, 16  ;;  %p1682_p7 = scmp.lt.s32.totalorder %s32_s11, %s32_s11 }
  0x2c   :  { %p1678_p6 = scmp.ne.s32.totalorder %s32_s11, %s1677_s12  ;;  %p1683_p8 = scmp.lt.s32.totalorder %s1677_s12, %s1677_s12 }
  0x2e   :  { %p1684_p9 = por %p1683_p8, %p1682_p7 }
  0x30   :  { %p1685_p10 = pnand %p1684_p9, %p1678_p6 }
  0x32   :  { %1688 = shalt.err (!%p1685_p10)  }
  0x33   :  { %s1703_s13 = smov [#allocation8]  }
  0x34   :  { %34 = dma.vmem_to_smem %s32_s11, 16, %s1703_s13, [#allocation3] }
  0x35   :  { %1693 = dma.done.wait [#allocation3], 80 }
  0x36   :  { %1694 = vsyncadd [#allocation3], 4294967216 }
  0x37   :  { %36 = sfence }
  0x38   :  { %s1778_s14 = smov 0  }
  0x39 LB: > { %s1784_s4 = sadd.s32 4294967295, %s1697_s14   ;;  %p1204_p11 = scmp.ge.s32.totalorder %s1697_s14, 1  ;;  %s1697_s14 = sphi %s1778_s14, %s42_s14  }
  0x3a   : > { %p233_p12 = scmp.lt.s32.totalorder %s1697_s14, 3 }
  0x3c   : > { %p234_p13 = pnand %p1204_p11, %p233_p12 }
  0x3d   : > { %s267_s15 = sld [smem:[#allocation5 + %s1784_s4]] (!%p234_p13) }
  0x3e   : > { %237 = sbr.rel (%p234_p13) target bundleno = 1313 (0x521), region = 40  ;;  %s275_s16 = sld [smem:[#allocation5 + %s1784_s4]] (!%p234_p13) }
  0x3f   : > { %s280_s17 = sld [smem:[#allocation4 + %s1784_s4]] (!%p234_p13) }
  0x40   : > { %s289_s18 = sld [smem:[#allocation6 + %s1784_s4]] (!%p234_p13) }
  0x41   : > { %s1793_s19 = sld [smem:[#allocation7 + %s1784_s4]] (!%p234_p13) }
  0x42   : > { %s293_s20 = sld [smem:[#allocation8 + %s1784_s4]] (!%p234_p13) }
  0x43   : > { %s1205_s21 = sshll.u32 (!%p234_p13), %s267_s15, 4 }
  0x44   : > { %p276_p0 = scmp.lt.s32.totalorder (!%p234_p13), %s275_s16, 0  ;;  %p269_p1 = scmp.lt.s32.totalorder (!%p234_p13), %s1205_s21, 15 }
  0x45   : > { %s1207_s0 = sshll.u32 %s280_s17, 1 }
  0x46   : > { %s2118_s16 = smov (!%p276_p0, %s275_s16), 0  ;;  %s2120_s21 = smov (!%p269_p1, %s1205_s21), 15 }
  0x47   : > { %s278_s23 = scalar_lea.vmem %s2108_s6, %s2118_s16  ;;  %p282_p2 = scmp.lt.s32.totalorder %s1207_s0, 1 }
  0x48   : > { %s1206_s24 = sshll.u32 %s2120_s21, 2  ;;  %p1209_p3 = scmp.eq.s32.totalorder %s289_s18, 0 }
  0x49   : > { %s1805_s27 = scalar_lea.vmem %s2107_s5, %s1206_s24  ;;  %s2122_s0 = smov (!%p282_p2, %s1207_s0), 1  ;;  %v1704_v0 = vmov (!%p1209_p3), 0.0  }
  0x4a   : > { %s1208_s28 = sshll.u32 %s2122_s0, 2  ;;  %297 = sbr.rel (%p1209_p3) target bundleno = 81 (0x51), region = 44  ;;  %298 = vst [vmem:[#allocation2] sm:$0xff] (!%p1209_p3), %v1704_v0  ;;  %299 = vst [vmem:[#allocation2 + $0x8] sm:$0xff] (!%p1209_p3), %v1704_v0 }
  0x4b   : > { %s1810_s3 = scalar_lea.vmem %s2112_s10, %s1208_s28 }
  0x51 PF: > { %p1210_p4 = scmp.eq.s32.totalorder %s293_s20, 0 }
  0x52   : > { %v335_v1 = vld [vmem:[%s2110_s8] sm:$0xff] (!%p1210_p4)  ;;  %v336_v2 = vld [vmem:[%s2110_s8 + $0x8] sm:$0xff] (!%p1210_p4)  ;;  %v337_v3 = vld [vmem:[%s2110_s8 + $0x10] sm:$0xff] (!%p1210_p4)  ;;  %vm593_vm8 = vcmask (!%p1210_p4), 64512   ;;  %s2003_s2 = sld [smem:[#allocation4 + %s1784_s4]] (!%p1210_p4) }
  0x53   : > { %302 = sbr.rel (%p1210_p4) target bundleno = 814 (0x32e), region = 48  ;;  %v1508_v4 = vpack.c.bf16 (!%p1210_p4), %v336_v2, %v335_v1  ;;  %v338_v5 = vld [vmem:[%s2110_s8 + $0x18] sm:$0xff] (!%p1210_p4)  ;;  %v339_v7 = vld [vmem:[%s2110_s8 + $0x20] sm:$0xff] (!%p1210_p4)  ;;  %v340_v8 = vld [vmem:[%s2110_s8 + $0x28] sm:$0xff] (!%p1210_p4) }
  0x54   : > { %v1512_v6 = vpack.c.bf16 (!%p1210_p4), %v338_v5, %v337_v3  ;;  %v1516_v9 = vpack.c.bf16 (!%p1210_p4), %v340_v8, %v339_v7  ;;  %v1831_v10 = vld [vmem:[%s1805_s27] sm:$0xff] (!%p1210_p4)   ;;  %v341_v11 = vld [vmem:[%s2110_s8 + $0x30] sm:$0xff] (!%p1210_p4)  ;;  %v342_v12 = vld [vmem:[%s2110_s8 + $0x38] sm:$0xff] (!%p1210_p4) }
  0x55   : > { %1509 = vmatprep.subr.bf16.mxu0 (!%p1210_p4), %v1508_v4  ;;  %v1245_v13 = vunpack.c.l.bf16 (!%p1210_p4), %v1831_v10  ;;  %v1520_v14 = vpack.c.bf16 (!%p1210_p4), %v342_v12, %v341_v11  ;;  %v343_v15 = vld [vmem:[%s2110_s8 + $0x40] sm:$0xff] (!%p1210_p4)  ;;  %v344_v16 = vld [vmem:[%s2110_s8 + $0x48] sm:$0xff] (!%p1210_p4)  ;;  %v345_v18 = vld [vmem:[%s2110_s8 + $0x50] sm:$0xff] (!%p1210_p4)  ;;  %v1246_v28 = vunpack.c.h.bf16 (!%p1210_p4), %v1831_v10 }
  0x56   : > { %1511 = vmatpush3.bf16.msra.mxu0 (!%p1210_p4), %v1508_v4  ;;  %v1524_v17 = vpack.c.bf16 (!%p1210_p4), %v344_v16, %v343_v15  ;;  %v346_v19 = vld [vmem:[%s2110_s8 + $0x58] sm:$0xff] (!%p1210_p4)  ;;  %v347_v21 = vld [vmem:[%s2110_s8 + $0x60] sm:$0xff] (!%p1210_p4)  ;;  %v348_v22 = vld [vmem:[%s2110_s8 + $0x68] sm:$0xff] (!%p1210_p4) }
  0x57   : > { %1513 = vmatprep.subr.bf16.mxu0 (!%p1210_p4), %v1512_v6  ;;  %1398 = vmatprep.mubr.f32.mxu0 (!%p1210_p4), %v1245_v13  ;;  %v1528_v20 = vpack.c.bf16 (!%p1210_p4), %v346_v19, %v345_v18  ;;  %v1532_v23 = vpack.c.bf16 (!%p1210_p4), %v348_v22, %v347_v21  ;;  %v349_v24 = vld [vmem:[%s2110_s8 + $0x70] sm:$0xff] (!%p1210_p4)  ;;  %v350_v25 = vld [vmem:[%s2110_s8 + $0x78] sm:$0xff] (!%p1210_p4)  ;;  %v1867_v27 = vld [vmem:[%s1805_s27 + $0x8] sm:$0xff] (!%p1210_p4)  }
  0x58   : > { %v1536_v26 = vpack.c.bf16 (!%p1210_p4), %v350_v25, %v349_v24  ;;  %v1249_v29 = vunpack.c.l.bf16 (!%p1210_p4), %v1867_v27  ;;  %v1872_v30 = vld [vmem:[%s1805_s27 + $0x10] sm:$0xff] (!%p1210_p4)   ;;  %v1250_v31 = vunpack.c.h.bf16 (!%p1210_p4), %v1867_v27  ;;  %v1881_v33 = vld [vmem:[%s1805_s27 + $0x18] sm:$0xff] (!%p1210_p4)   ;;  %v1890_v36 = vld [vmem:[%s1805_s27 + $0x20] sm:$0xff] (!%p1210_p4)   ;;  %s1227_s4 = sshll.u32 (!%p1210_p4), %s2003_s2, 4 }
  0x59   : > { %v1253_v32 = vunpack.c.l.bf16 (!%p1210_p4), %v1872_v30  ;;  %v1254_v34 = vunpack.c.h.bf16 (!%p1210_p4), %v1872_v30  ;;  %v1257_v35 = vunpack.c.l.bf16 (!%p1210_p4), %v1881_v33  ;;  %v1258_v37 = vunpack.c.h.bf16 (!%p1210_p4), %v1881_v33  ;;  %v1899_v39 = vld [vmem:[%s1805_s27 + $0x28] sm:$0xff] (!%p1210_p4)   ;;  %v1908_v42 = vld [vmem:[%s1805_s27 + $0x30] sm:$0xff] (!%p1210_p4)   ;;  %v1917_v45 = vld [vmem:[%s1805_s27 + $0x38] sm:$0xff] (!%p1210_p4)  }
  0x5a   : > { %1515 = vmatpush3.bf16.msra.mxu0 %v1512_v6  ;;  %v1261_v38 = vunpack.c.l.bf16 %v1890_v36  ;;  %v1262_v40 = vunpack.c.h.bf16 %v1890_v36  ;;  %v1265_v41 = vunpack.c.l.bf16 %v1899_v39  ;;  %v1266_v43 = vunpack.c.h.bf16 %v1899_v39  ;;  %v592_v49 = vld [vmem:[%s2109_s7] sm:$0xff] }
  0x5b   : > { %1517 = vmatprep.subr.bf16.mxu0 %v1516_v9  ;;  %v1269_v44 = vunpack.c.l.bf16 %v1908_v42  ;;  %v1270_v46 = vunpack.c.h.bf16 %v1908_v42  ;;  %v1273_v47 = vunpack.c.l.bf16 %v1917_v45  ;;  %v1274_v48 = vunpack.c.h.bf16 %v1917_v45  ;;  %1422 = vmatprep.subr.mxu1 %v592_v49 }
  0x5c   : > { %1423 = vmatpush3.msra.mxu1 %v592_v49 }
  0x5e   : > { %1519 = vmatpush3.bf16.msra.mxu0 %v1516_v9 }
  0x5f   : > { %1521 = vmatprep.subr.bf16.mxu0 %v1520_v14 }
  0x62   : > { %1523 = vmatpush3.bf16.msra.mxu0 %v1520_v14 }
  0x63   : > { %1525 = vmatprep.subr.bf16.mxu0 %v1524_v17 }
  0x66   : > { %1527 = vmatpush3.bf16.msra.mxu0 %v1524_v17 }
  0x67   : > { %1529 = vmatprep.subr.bf16.mxu0 %v1528_v20 }
  0x6a   : > { %1531 = vmatpush3.bf16.msra.mxu0 %v1528_v20 }
  0x6b   : > { %1533 = vmatprep.subr.bf16.mxu0 %v1532_v23 }
  0x6e   : > { %1535 = vmatpush3.bf16.msra.mxu0 %v1532_v23 }
  0x6f   : > { %1537 = vmatprep.subr.bf16.mxu0 %v1536_v26 }
  0x72   : > { %1539 = vmatpush3.bf16.msra.mxu0 %v1536_v26 }
  0x75   : > { %1399 = vmatmul.mubr.f32.vlgmr.msra.gmra.mrb[0].mxu0 %v1246_v28 }
  0x76   : > { %1401 = vmatprep.mubr.f32.mxu0 %v1249_v29 }
  0x79   : > { %1402 = vmatmul.mubr.f32.gmra.mrb[2].mxu0 %v1250_v31 }
  0x7a   : > { %1404 = vmatprep.mubr.f32.mxu0 %v1253_v32 }
  0x7d   : > { %1405 = vmatmul.mubr.f32.gmra.mrb[4].mxu0 %v1254_v34 }
  0x7e   : > { %1407 = vmatprep.mubr.f32.mxu0 %v1257_v35 }
  0x81   : > { %1408 = vmatmul.mubr.f32.gmra.mrb[6].mxu0 %v1258_v37 }
  0x82   : > { %1410 = vmatprep.mubr.f32.mxu0 %v1261_v38 }
  0x85   : > { %1411 = vmatmul.mubr.f32.gmra.mrb[8].mxu0 %v1262_v40 }
  0x86   : > { %1413 = vmatprep.mubr.f32.mxu0 %v1265_v41 }
  0x89   : > { %1414 = vmatmul.mubr.f32.gmra.mrb[10].mxu0 %v1266_v43 }
  0x8a   : > { %1416 = vmatprep.mubr.f32.mxu0 %v1269_v44 }
  0x8d   : > { %1417 = vmatmul.mubr.f32.gmra.mrb[12].mxu0 %v1270_v46 }
  0x8e   : > { %1419 = vmatprep.mubr.f32.mxu0 %v1273_v47 }
  0x91   : > { %1420 = vmatmul.mubr.f32.gmra.mrb[14].mxu0 %v1274_v48 }
 0x148   : > { %v1400_v50 = vpop.f32.mrb[0].mxu0 }
 0x149   : > { %vm497_vm0 = vcmp.gt.f32.partialorder %v1400_v50, 0.0  ;;  %v513_v51 = vmul.f32 0.2, %v1400_v50  ;;  %v417_v52 = vpop.f32.mrb[1].mxu0 }
 0x14a   : > { %vm496_vm1 = vcmp.gt.f32.partialorder %v417_v52, 0.0  ;;  %v512_v53 = vmul.f32 0.2, %v417_v52 }
 0x14b   : > { %v529_v54 = vsel %vm497_vm0, %v1400_v50, %v513_v51 }
 0x14c   : > { %v545_v55 = vsub.f32 0.0, %v529_v54  ;;  %v528_v56 = vsel %vm496_vm1, %v417_v52, %v512_v53  ;;  %v1403_v57 = vpop.f32.mrb[2].mxu0  ;;  %vm1706_vm1 = vmmov 0  }
 0x14d   : > { %v544_v58 = vsub.f32 0.0, %v528_v56  ;;  %vm499_vm2 = vcmp.gt.f32.partialorder %v1403_v57, 0.0  ;;  %v515_v59 = vmul.f32 0.2, %v1403_v57  ;;  %v427_v60 = vpop.f32.mrb[3].mxu0 }
 0x14e   : > { %v562_v61 = vmul.f32 1.442695, %v545_v55  ;;  %vm498_vm3 = vcmp.gt.f32.partialorder %v427_v60, 0.0  ;;  %v514_v62 = vmul.f32 0.2, %v427_v60 }
 0x14f   : > { %v560_v63 = vmul.f32 1.442695, %v544_v58  ;;  %v531_v0 = vsel %vm499_vm2, %v1403_v57, %v515_v59 }
 0x150   : > { %v547_v1 = vsub.f32 0.0, %v531_v0  ;;  %v530_v2 = vsel %vm498_vm3, %v427_v60, %v514_v62  ;;  %v1406_v3 = vpop.f32.mrb[4].mxu0 }
 0x151   : > { %1589 = vpow2.f32 %v560_v63  ;;  %v546_v4 = vsub.f32 0.0, %v530_v2  ;;  %vm501_vm4 = vcmp.gt.f32.partialorder %v1406_v3, 0.0  ;;  %v517_v5 = vmul.f32 0.2, %v1406_v3  ;;  %v437_v6 = vpop.f32.mrb[5].mxu0 }
 0x152   : > { %1591 = vpow2.f32 %v562_v61  ;;  %v566_v7 = vmul.f32 1.442695, %v547_v1  ;;  %vm500_vm5 = vcmp.gt.f32.partialorder %v437_v6, 0.0  ;;  %v516_v8 = vmul.f32 0.2, %v437_v6 }
 0x153   : > { %v564_v9 = vmul.f32 1.442695, %v546_v4  ;;  %v533_v11 = vsel %vm501_vm4, %v1406_v3, %v517_v5 }
 0x154   : > { %v549_v12 = vsub.f32 0.0, %v533_v11  ;;  %v532_v14 = vsel %vm500_vm5, %v437_v6, %v516_v8  ;;  %v1409_v15 = vpop.f32.mrb[6].mxu0 }
 0x155   : > { %1593 = vpow2.f32 %v564_v9  ;;  %v548_v16 = vsub.f32 0.0, %v532_v14  ;;  %vm503_vm6 = vcmp.gt.f32.partialorder %v1409_v15, 0.0  ;;  %v519_v17 = vmul.f32 0.2, %v1409_v15  ;;  %v447_v18 = vpop.f32.mrb[7].mxu0 }
 0x156   : > { %1595 = vpow2.f32 %v566_v7  ;;  %v570_v19 = vmul.f32 1.442695, %v549_v12  ;;  %vm502_vm7 = vcmp.gt.f32.partialorder %v447_v18, 0.0  ;;  %v518_v20 = vmul.f32 0.2, %v447_v18 }
 0x157   : > { %v568_v21 = vmul.f32 1.442695, %v548_v16  ;;  %v535_v22 = vsel %vm503_vm6, %v1409_v15, %v519_v17 }
 0x158   : > { %v551_v23 = vsub.f32 0.0, %v535_v22  ;;  %v534_v24 = vsel %vm502_vm7, %v447_v18, %v518_v20  ;;  %v1412_v25 = vpop.f32.mrb[8].mxu0 }
 0x159   : > { %1597 = vpow2.f32 %v568_v21  ;;  %v550_v26 = vsub.f32 0.0, %v534_v24  ;;  %vm505_vm9 = vcmp.gt.f32.partialorder %v1412_v25, 0.0  ;;  %v521_v49 = vmul.f32 0.2, %v1412_v25  ;;  %v457_v50 = vpop.f32.mrb[9].mxu0 }
 0x15a   : > { %1599 = vpow2.f32 %v570_v19  ;;  %v574_v51 = vmul.f32 1.442695, %v551_v23  ;;  %vm504_vm10 = vcmp.gt.f32.partialorder %v457_v50, 0.0  ;;  %v520_v52 = vmul.f32 0.2, %v457_v50 }
 0x15b   : > { %v1590_v53 = vpop.eup %1589  ;;  %v572_v54 = vmul.f32 1.442695, %v550_v26  ;;  %v537_v55 = vsel %vm505_vm9, %v1412_v25, %v521_v49 }
 0x15c   : > { %v1592_v56 = vpop.eup %1591  ;;  %v553_v57 = vsub.f32 0.0, %v537_v55  ;;  %v536_v58 = vsel %vm504_vm10, %v457_v50, %v520_v52  ;;  %v1415_v59 = vpop.f32.mrb[10].mxu0  ;;  %1424 = vmatprep.mubr.msk.f32.mxu1 %vm593_vm8, %v1590_v53 }
 0x15d   : > { %1601 = vpow2.f32 %v572_v54  ;;  %v552_v60 = vsub.f32 0.0, %v536_v58  ;;  %vm507_vm11 = vcmp.gt.f32.partialorder %v1415_v59, 0.0  ;;  %v523_v61 = vmul.f32 0.2, %v1415_v59  ;;  %v467_v62 = vpop.f32.mrb[11].mxu0  ;;  %1425 = vmatmul.mubr.msk.f32.vlgmr.msra.gmra.mrb[0].mxu1 %vm593_vm8, %v1592_v56 }
 0x15e   : > { %1603 = vpow2.f32 %v574_v51  ;;  %v578_v63 = vmul.f32 1.442695, %v553_v57  ;;  %vm506_vm12 = vcmp.gt.f32.partialorder %v467_v62, 0.0  ;;  %v522_v0 = vmul.f32 0.2, %v467_v62 }
 0x15f   : > { %v1594_v1 = vpop.eup %1593  ;;  %v576_v2 = vmul.f32 1.442695, %v552_v60  ;;  %v539_v3 = vsel %vm507_vm11, %v1415_v59, %v523_v61 }
 0x160   : > { %v1596_v4 = vpop.eup %1595  ;;  %v555_v5 = vsub.f32 0.0, %v539_v3  ;;  %v538_v6 = vsel %vm506_vm12, %v467_v62, %v522_v0  ;;  %v1418_v7 = vpop.f32.mrb[12].mxu0  ;;  %1427 = vmatprep.mubr.msk.f32.mxu1 %vm593_vm8, %v1594_v1  ;;  %v790_v3 = vlaneseq }
 0x161   : > { %1605 = vpow2.f32 %v576_v2  ;;  %v554_v8 = vsub.f32 0.0, %v538_v6  ;;  %vm509_vm13 = vcmp.gt.f32.partialorder %v1418_v7, 0.0  ;;  %v525_v9 = vmul.f32 0.2, %v1418_v7  ;;  %v477_v11 = vpop.f32.mrb[13].mxu0  ;;  %1428 = vmatmul.mubr.msk.f32.gmra.mrb[2].mxu1 %vm593_vm8, %v1596_v4 }
 0x162   : > { %1607 = vpow2.f32 %v578_v63  ;;  %v582_v12 = vmul.f32 1.442695, %v555_v5  ;;  %vm508_vm14 = vcmp.gt.f32.partialorder %v477_v11, 0.0  ;;  %v524_v14 = vmul.f32 0.2, %v477_v11 }
 0x163   : > { %v1598_v15 = vpop.eup %1597  ;;  %v580_v16 = vmul.f32 1.442695, %v554_v8  ;;  %v541_v17 = vsel %vm509_vm13, %v1418_v7, %v525_v9  ;;  %v1705_v2 = vmov 0.0   ;;  %v1953_v4 = vshrl.u32 %v790_v3, 7  ;;  %v787_v5 = vld [vmem:[%s2111_s9] sm:$0x1] }
 0x164   : > { %v1600_v18 = vpop.eup %1599  ;;  %v557_v19 = vsub.f32 0.0, %v541_v17  ;;  %v540_v20 = vsel %vm508_vm14, %v477_v11, %v524_v14  ;;  %v1421_v21 = vpop.f32.mrb[14].mxu0  ;;  %1430 = vmatprep.mubr.msk.f32.mxu1 %vm593_vm8, %v1598_v15  ;;  %1448 = vmatprep.subr.bf16.mxu1 %v1705_v2  ;;  %v788_v6 = vsub.f32 1.0, %v787_v5 }
 0x165   : > { %1609 = vpow2.f32 %v580_v16  ;;  %v556_v22 = vsub.f32 0.0, %v540_v20  ;;  %vm511_vm15 = vcmp.gt.f32.partialorder %v1421_v21, 0.0  ;;  %v527_v23 = vmul.f32 0.2, %v1421_v21  ;;  %v487_v24 = vpop.f32.mrb[15].mxu0  ;;  %1431 = vmatmul.mubr.msk.f32.gmra.mrb[4].mxu1 %vm593_vm8, %v1600_v18 }
 0x166   : > { %1611 = vpow2.f32 %v582_v12  ;;  %v586_v25 = vmul.f32 1.442695, %v557_v19  ;;  %vm510_vm0 = vcmp.gt.f32.partialorder %v487_v24, 0.0  ;;  %v526_v26 = vmul.f32 0.2, %v487_v24 }
 0x167   : > { %v1602_v49 = vpop.eup %1601  ;;  %v584_v50 = vmul.f32 1.442695, %v556_v22  ;;  %v543_v51 = vsel %vm511_vm15, %v1421_v21, %v527_v23  ;;  %v1959_v7 = vsub.s32 0, %v1953_v4 }
 0x168   : > { %v1604_v52 = vpop.eup %1603  ;;  %v559_v53 = vsub.f32 0.0, %v543_v51  ;;  %v542_v54 = vsel %vm510_vm0, %v487_v24, %v526_v26  ;;  %1433 = vmatprep.mubr.msk.f32.mxu1 %vm593_vm8, %v1602_v49 }
 0x169   : > { %1613 = vpow2.f32 %v584_v50  ;;  %v558_v55 = vsub.f32 0.0, %v542_v54  ;;  %1434 = vmatmul.mubr.msk.f32.gmra.mrb[6].mxu1 %vm593_vm8, %v1604_v52  ;;  %v1962_v8 = vrot.slane %v788_v6, %v1959_v7  ;;  %v1968_v11 = vrot.slane %v787_v5, %v1959_v7  ;;  %v859_v6 = vld [vmem:[%s278_s23] sm:$0x1] }
 0x16a   : > { %1615 = vpow2.f32 %v586_v25  ;;  %v590_v56 = vmul.f32 1.442695, %v559_v53 }
 0x16b   : > { %v1606_v57 = vpop.eup %1605  ;;  %v588_v58 = vmul.f32 1.442695, %v558_v55  ;;  %v796_v9 = vmul.f32 %v1246_v28, %v1962_v8  ;;  %v795_v12 = vmul.f32 %v1245_v13, %v1962_v8  ;;  %v798_v15 = vmul.f32 %v1250_v31, %v1962_v8 }
 0x16c   : > { %v1608_v59 = vpop.eup %1607  ;;  %1436 = vmatprep.mubr.msk.f32.mxu1 %vm593_vm8, %v1606_v57  ;;  %v797_v17 = vmul.f32 %v1249_v29, %v1962_v8  ;;  %v800_v10 = vmul.f32 %v1254_v34, %v1962_v8  ;;  %v799_v31 = vmul.f32 %v1253_v32, %v1962_v8  ;;  %v802_v25 = vmul.f32 %v1258_v37, %v1962_v8 }
 0x16d   : > { %1617 = vpow2.f32 %v588_v58  ;;  %1437 = vmatmul.mubr.msk.f32.gmra.mrb[8].mxu1 %vm593_vm8, %v1608_v59  ;;  %v818_v14 = vadd.f32 %v1968_v11, %v796_v9  ;;  %v817_v16 = vadd.f32 %v1968_v11, %v795_v12  ;;  %v820_v20 = vadd.f32 %v1968_v11, %v798_v15 }
 0x16e   : > { %1619 = vpow2.f32 %v590_v56  ;;  %v819_v21 = vadd.f32 %v1968_v11, %v797_v17  ;;  %v822_v24 = vadd.f32 %v1968_v11, %v800_v10  ;;  %v821_v34 = vadd.f32 %v1968_v11, %v799_v31 }
 0x16f   : > { %v1610_v60 = vpop.eup %1609  ;;  %v801_v30 = vmul.f32 %v1257_v35, %v1962_v8  ;;  %v824_v52 = vadd.f32 %v1968_v11, %v802_v25  ;;  %v804_v37 = vmul.f32 %v1262_v40, %v1962_v8  ;;  %v803_v33 = vmul.f32 %v1261_v38, %v1962_v8  ;;  %v877_v25 = vld [vmem:[#allocation2 + $0x8] sm:$0xff] }
 0x170   : > { %v1612_v61 = vpop.eup %1611  ;;  %1439 = vmatprep.mubr.msk.f32.mxu1 %vm593_vm8, %v1610_v60  ;;  %v806_v40 = vmul.f32 %v1266_v43, %v1962_v8  ;;  %v805_v36 = vmul.f32 %v1265_v41, %v1962_v8  ;;  %v808_v43 = vmul.f32 %v1270_v46, %v1962_v8  ;;  %v807_v39 = vmul.f32 %v1269_v44, %v1962_v8 }
 0x171   : > { %1440 = vmatmul.mubr.msk.f32.gmra.mrb[10].mxu1 %vm593_vm8, %v1612_v61  ;;  %v823_v54 = vadd.f32 %v1968_v11, %v801_v30  ;;  %v826_v58 = vadd.f32 %v1968_v11, %v804_v37  ;;  %v825_v60 = vadd.f32 %v1968_v11, %v803_v33  ;;  %v860_v9 = vstv %s1227_s4 }
 0x172   : > { %v827_v3 = vadd.f32 %v1968_v11, %v805_v36  ;;  %v810_v15 = vmul.f32 %v1274_v48, %v1962_v8  ;;  %v829_v44 = vadd.f32 %v1968_v11, %v807_v39  ;;  %v861_v17 = vsub.s32 %v859_v6, %v860_v9 }
 0x173   : > { %v1614_v62 = vpop.eup %1613 }
 0x174   : > { %v1616_v63 = vpop.eup %1615  ;;  %1442 = vmatprep.mubr.msk.f32.mxu1 %vm593_vm8, %v1614_v62  ;;  %v832_v10 = vadd.f32 %v1968_v11, %v810_v15  ;;  %v868_v45 = vrot.slane %v861_v17, %v1959_v7 }
 0x175   : > { %1443 = vmatmul.mubr.msk.f32.gmra.mrb[12].mxu1 %vm593_vm8, %v1616_v63 }
 0x176   : > { %vm869_vm2 = vcmp.eq.s32.totalorder %v1953_v4, %v868_v45 }
 0x177   : > { %v1618_v0 = vpop.eup %1617 }
 0x178   : > { %v1620_v1 = vpop.eup %1619  ;;  %1445 = vmatprep.mubr.msk.f32.mxu1 %vm593_vm8, %v1618_v0  ;;  %v828_v0 = vadd.f32 %v1968_v11, %v806_v40 }
 0x179   : > { %1446 = vmatmul.mubr.msk.f32.gmra.mrb[14].mxu1 %vm593_vm8, %v1620_v1 }
 0x17a   : > { %1464 = vmatprep.mubr.msk.bf16.mxu1 %vm1706_vm1, %v1705_v2 }
 0x230   : > { %v1426_v28 = vpop.f32.mrb[0].mxu1 }
 0x231   : > { %v834_v18 = vmul.f32 %v1426_v28, %v818_v14  ;;  %v708_v19 = vpop.f32.mrb[1].mxu1  ;;  %v830_v14 = vadd.f32 %v1968_v11, %v808_v43 }
 0x232   : > { %v833_v13 = vmul.f32 %v817_v16, %v708_v19  ;;  %v809_v16 = vmul.f32 %v1273_v47, %v1962_v8 }
 0x234   : > { %v849_v22 = vpack.c.bf16 %v834_v18, %v833_v13  ;;  %v1429_v23 = vpop.f32.mrb[2].mxu1  ;;  %v831_v48 = vadd.f32 %v1968_v11, %v809_v16  ;;  %v1707_v11 = vmov 1.0|1.0  }
 0x235   : > { %v836_v27 = vmul.f32 %v1429_v23, %v820_v20  ;;  %v718_v29 = vpop.f32.mrb[3].mxu1 }
 0x236   : > { %v835_v26 = vmul.f32 %v819_v21, %v718_v29  ;;  %1449 = vmatpush3.bf16.msra.mxu1 %v849_v22  ;;  %v864_v21 = vadd.s32 8, %v1953_v4  ;;  %v876_v29 = vld [vmem:[#allocation2] sm:$0xff] }
 0x237   : > { %1450 = vmatprep.subr.bf16.mxu1 %v1705_v2 }
 0x238   : > { %v850_v32 = vpack.c.bf16 %v836_v27, %v835_v26  ;;  %v1432_v49 = vpop.f32.mrb[4].mxu1  ;;  %vm870_vm3 = vcmp.eq.s32.totalorder %v864_v21, %v868_v45 }
 0x239   : > { %v838_v50 = vmul.f32 %v1432_v49, %v822_v24  ;;  %v728_v51 = vpop.f32.mrb[5].mxu1  ;;  %vm1230_vm4 = vmpackc.low %vm870_vm3, %vm869_vm2 }
 0x23a   : > { %v837_v53 = vmul.f32 %v821_v34, %v728_v51  ;;  %1451 = vmatpush3.bf16.msra.mxu1 %v850_v32 }
 0x23b   : > { %1452 = vmatprep.subr.bf16.mxu1 %v1705_v2 }
 0x23c   : > { %v851_v35 = vpack.c.bf16 %v838_v50, %v837_v53  ;;  %v1435_v55 = vpop.f32.mrb[6].mxu1 }
 0x23d   : > { %v840_v56 = vmul.f32 %v1435_v55, %v824_v52  ;;  %v738_v57 = vpop.f32.mrb[7].mxu1 }
 0x23e   : > { %v839_v59 = vmul.f32 %v823_v54, %v738_v57  ;;  %1453 = vmatpush3.bf16.msra.mxu1 %v851_v35 }
 0x23f   : > { %1454 = vmatprep.subr.bf16.mxu1 %v1705_v2 }
 0x240   : > { %v852_v38 = vpack.c.bf16 %v840_v56, %v839_v59  ;;  %v1438_v61 = vpop.f32.mrb[8].mxu1 }
 0x241   : > { %v842_v62 = vmul.f32 %v1438_v61, %v826_v58  ;;  %v748_v63 = vpop.f32.mrb[9].mxu1 }
 0x242   : > { %v841_v1 = vmul.f32 %v825_v60, %v748_v63  ;;  %1455 = vmatpush3.bf16.msra.mxu1 %v852_v38 }
 0x243   : > { %1456 = vmatprep.subr.bf16.mxu1 %v1705_v2 }
 0x244   : > { %v853_v41 = vpack.c.bf16 %v842_v62, %v841_v1  ;;  %v1441_v5 = vpop.f32.mrb[10].mxu1 }
 0x245   : > { %v844_v46 = vmul.f32 %v1441_v5, %v828_v0  ;;  %v758_v12 = vpop.f32.mrb[11].mxu1 }
 0x246   : > { %v843_v42 = vmul.f32 %v827_v3, %v758_v12  ;;  %1457 = vmatpush3.bf16.msra.mxu1 %v853_v41 }
 0x247   : > { %1458 = vmatprep.subr.bf16.mxu1 %v1705_v2 }
 0x248   : > { %v854_v28 = vpack.c.bf16 %v844_v46, %v843_v42  ;;  %v1444_v18 = vpop.f32.mrb[12].mxu1 }
 0x249   : > { %v846_v19 = vmul.f32 %v1444_v18, %v830_v14  ;;  %v768_v20 = vpop.f32.mrb[13].mxu1 }
 0x24a   : > { %v845_v13 = vmul.f32 %v829_v44, %v768_v20  ;;  %1459 = vmatpush3.bf16.msra.mxu1 %v854_v28 }
 0x24b   : > { %1460 = vmatprep.subr.bf16.mxu1 %v1705_v2 }
 0x24c   : > { %v855_v47 = vpack.c.bf16 %v846_v19, %v845_v13  ;;  %v1447_v8 = vpop.f32.mrb[14].mxu1 }
 0x24d   : > { %v848_v31 = vmul.f32 %v1447_v8, %v832_v10  ;;  %v778_v22 = vpop.f32.mrb[15].mxu1 }
 0x24e   : > { %v847_v23 = vmul.f32 %v831_v48, %v778_v22  ;;  %1461 = vmatpush3.bf16.msra.mxu1 %v855_v47 }
 0x24f   : > { %1462 = vmatprep.subr.bf16.mxu1 %v1705_v2 }
 0x250   : > { %v856_v27 = vpack.c.bf16 %v848_v31, %v847_v23 }
 0x252   : > { %1463 = vmatpush3.bf16.msra.mxu1 %v856_v27 }
 0x255   : > { %1465 = vmatmul.mubr.msk.bf16.vlgmr.msra.gmra.mrb[16].mxu1 %vm1230_vm4, %v1707_v11 }
 0x328   : > { %v912_v24 = vpop.f32.mrb[16].mxu1 }
 0x329   : > { %v919_v7 = vadd.f32 %v912_v24, %v876_v29  ;;  %v1466_v26 = vpop.f32.mrb[17].mxu1 }
 0x32a   : > { %v915_v34 = vpop.f32.mrb[18].mxu1 }
 0x32b   : > { %921 = vst [vmem:[#allocation2] sm:$0xff] %v919_v7  ;;  %v920_v30 = vadd.f32 %v915_v34, %v877_v25  ;;  %v1467_v32 = vpop.f32.mrb[19].mxu1 }
 0x32d   : > { %922 = vst [vmem:[#allocation2 + $0x8] sm:$0xff] %v920_v30 }
 0x32e PF: > { %p1232_p5 = scmp.eq.s32.totalorder %s1793_s19, 0 }
 0x32f   : > { %v928_v2 = vld [vmem:[%s2110_s8] sm:$0xff] (!%p1232_p5)  ;;  %v929_v4 = vld [vmem:[%s2110_s8 + $0x8] sm:$0xff] (!%p1232_p5)  ;;  %v930_v49 = vld [vmem:[%s2110_s8 + $0x10] sm:$0xff] (!%p1232_p5)  ;;  %vm1026_vm7 = vcmask (!%p1232_p5), 64512  }
 0x330   : > { %925 = sbr.rel (%p1232_p5) target bundleno = 1313 (0x521), region = 52  ;;  %v1540_v50 = vpack.c.bf16 (!%p1232_p5), %v929_v4, %v928_v2  ;;  %v931_v51 = vld [vmem:[%s2110_s8 + $0x18] sm:$0xff] (!%p1232_p5)  ;;  %v932_v37 = vld [vmem:[%s2110_s8 + $0x20] sm:$0xff] (!%p1232_p5)  ;;  %v933_v53 = vld [vmem:[%s2110_s8 + $0x28] sm:$0xff] (!%p1232_p5) }
 0x331   : > { %v1544_v52 = vpack.c.bf16 (!%p1232_p5), %v931_v51, %v930_v49  ;;  %v1548_v54 = vpack.c.bf16 (!%p1232_p5), %v933_v53, %v932_v37  ;;  %v934_v35 = vld [vmem:[%s2110_s8 + $0x30] sm:$0xff] (!%p1232_p5)  ;;  %v935_v55 = vld [vmem:[%s2110_s8 + $0x38] sm:$0xff] (!%p1232_p5)  ;;  %v936_v57 = vld [vmem:[%s2110_s8 + $0x40] sm:$0xff] (!%p1232_p5) }
 0x332   : > { %1541 = vmatprep.subr.bf16.mxu0 (!%p1232_p5), %v1540_v50  ;;  %v926_v33 = vld [vmem:[#allocation2] sm:$0xff] (!%p1232_p5)  ;;  %v1552_v56 = vpack.c.bf16 (!%p1232_p5), %v935_v55, %v934_v35  ;;  %v937_v58 = vld [vmem:[%s2110_s8 + $0x48] sm:$0xff] (!%p1232_p5)  ;;  %v938_v59 = vld [vmem:[%s2110_s8 + $0x50] sm:$0xff] (!%p1232_p5) }
 0x333   : > { %1543 = vmatpush3.bf16.msra.mxu0 (!%p1232_p5), %v1540_v50  ;;  %1500 = vmatprep.mubr.f32.mxu0 (!%p1232_p5), %v926_v33  ;;  %v1556_v40 = vpack.c.bf16 (!%p1232_p5), %v937_v58, %v936_v57  ;;  %v939_v60 = vld [vmem:[%s2110_s8 + $0x58] sm:$0xff] (!%p1232_p5)  ;;  %v940_v38 = vld [vmem:[%s2110_s8 + $0x60] sm:$0xff] (!%p1232_p5)  ;;  %v941_v61 = vld [vmem:[%s2110_s8 + $0x68] sm:$0xff] (!%p1232_p5) }
 0x334   : > { %1545 = vmatprep.subr.bf16.mxu0 (!%p1232_p5), %v1544_v52  ;;  %v1560_v36 = vpack.c.bf16 (!%p1232_p5), %v939_v60, %v938_v59  ;;  %v1564_v62 = vpack.c.bf16 (!%p1232_p5), %v941_v61, %v940_v38  ;;  %v942_v63 = vld [vmem:[%s2110_s8 + $0x70] sm:$0xff] (!%p1232_p5)  ;;  %v943_v0 = vld [vmem:[%s2110_s8 + $0x78] sm:$0xff] (!%p1232_p5)  ;;  %v927_v1 = vld [vmem:[#allocation2 + $0x8] sm:$0xff] (!%p1232_p5) }
 0x335   : > { %v1568_v43 = vpack.c.bf16 (!%p1232_p5), %v943_v0, %v942_v63  ;;  %v1025_v3 = vld [vmem:[%s2109_s7] sm:$0xff] (!%p1232_p5) }
 0x336   : > { %1503 = vmatprep.subr.mxu1 (!%p1232_p5), %v1025_v3 }
 0x337   : > { %1547 = vmatpush3.bf16.msra.mxu0 %v1544_v52  ;;  %1504 = vmatpush3.msra.mxu1 %v1025_v3 }
 0x338   : > { %1549 = vmatprep.subr.bf16.mxu0 %v1548_v54 }
 0x33b   : > { %1551 = vmatpush3.bf16.msra.mxu0 %v1548_v54 }
 0x33c   : > { %1553 = vmatprep.subr.bf16.mxu0 %v1552_v56 }
 0x33f   : > { %1555 = vmatpush3.bf16.msra.mxu0 %v1552_v56 }
 0x340   : > { %1557 = vmatprep.subr.bf16.mxu0 %v1556_v40 }
 0x343   : > { %1559 = vmatpush3.bf16.msra.mxu0 %v1556_v40 }
 0x344   : > { %1561 = vmatprep.subr.bf16.mxu0 %v1560_v36 }
 0x347   : > { %1563 = vmatpush3.bf16.msra.mxu0 %v1560_v36 }
 0x348   : > { %1565 = vmatprep.subr.bf16.mxu0 %v1564_v62 }
 0x34b   : > { %1567 = vmatpush3.bf16.msra.mxu0 %v1564_v62 }
 0x34c   : > { %1569 = vmatprep.subr.bf16.mxu0 %v1568_v43 }
 0x34f   : > { %1571 = vmatpush3.bf16.msra.mxu0 %v1568_v43 }
 0x352   : > { %1501 = vmatmul.mubr.f32.vlgmr.msra.gmra.mrb[0].mxu0 %v927_v1 }
 0x425   : > { %v1502_v39 = vpop.f32.mrb[0].mxu0 }
 0x426   : > { %vm1020_vm5 = vcmp.eq.f32.partialorder %v1502_v39, 0.0  ;;  %v1010_v41 = vpop.f32.mrb[1].mxu0 }
 0x427   : > { %v1022_v5 = vsel %vm1020_vm5, 1e-12, %v1502_v39  ;;  %vm1019_vm6 = vcmp.eq.f32.partialorder %v1010_v41, 0.0 }
 0x428   : > { %v1021_v6 = vsel %vm1019_vm6, 1e-12, %v1010_v41 }
 0x429   : > { %1621 = vrcp.f32 %v1021_v6 }
 0x42a   : > { %1623 = vrcp.f32 %v1022_v5 }
 0x433   : > { %v1622_v9 = vpop.eup %1621 }
 0x434   : > { %v1624_v46 = vpop.eup %1623  ;;  %1505 = vmatprep.mubr.msk.f32.mxu1 %vm1026_vm7, %v1622_v9 }
 0x435   : > { %1506 = vmatmul.mubr.msk.f32.vlgmr.msra.gmra.mrb[0].mxu1 %vm1026_vm7, %v1624_v46 }
 0x508   : > { %v1507_v12 = vpop.f32.mrb[0].mxu1 }
 0x509   : > { %v1109_v14 = vmul.f32 %v1507_v12, %v927_v1  ;;  %v1099_v15 = vpop.f32.mrb[1].mxu1 }
 0x50a   : > { %v1108_v42 = vmul.f32 %v1099_v15, %v926_v33 }
 0x50b   : > { %v1113_v44 = vmin.f32 %v1109_v14, 0.0  ;;  %vm1111_vm8 = vcmp.gt.f32.partialorder %v1109_v14, 0.0 }
 0x50c   : > { %v1112_v16 = vmin.f32 %v1108_v42, 0.0  ;;  %vm1110_vm9 = vcmp.gt.f32.partialorder %v1108_v42, 0.0 }
 0x50d   : > { %v1116_v17 = vmul.f32 1.442695, %v1113_v44 }
 0x50e   : > { %v1114_v28 = vmul.f32 1.442695, %v1112_v16 }
 0x50f   : > { %1625 = vpow2.f32 %v1116_v17 }
 0x510   : > { %1627 = vpow2.f32 %v1114_v28 }
 0x519   : > { %v1626_v18 = vpop.eup %1625 }
 0x51a   : > { %v1628_v19 = vpop.eup %1627  ;;  %v1236_v20 = vadd.f32 -1.0, %v1626_v18 }
 0x51b   : > { %v1235_v10 = vadd.f32 -1.0, %v1628_v19 }
 0x51c   : > { %v1121_v13 = vsel %vm1111_vm8, %v1109_v14, %v1236_v20 }
 0x51d   : > { %v1120_v48 = vsel %vm1110_vm9, %v1108_v42, %v1235_v10 }
 0x51e   : > { %v1278_v21 = vpack.c.bf16 %v1121_v13, %v1120_v48 }
 0x520   : > { %1279 = vst [vmem:[%s1810_s3] sm:$0xff] %v1278_v21  }
 0x521 PF: > { %s42_s14 = sadd.s32 1, %s1697_s14  }
 0x522   : > { %p39_p6 = scmp.ge.s32.totalorder %s42_s14, 4  }
 0x524   :  { %41 = sbr.rel (!%p39_p6) target bundleno = 57 (0x39), region = 85 }

// kernel: spgat_forward.2
= control target key start
LH: loop header
LB: loop body
LE: loop exit
PB: predicated region body
PF: predicated region fallthrough
CT: control target
= control target key end

     0   :  { %s2082_s0 = inlined_call_operand.vmem [shape: s32[2], index: 0, kind: input, shape index: {}]   ;;  %s2083_s5 = inlined_call_operand.vmem [shape: bf16[128,128], index: 5, kind: input, shape index: {}]   ;;  %s2084_s6 = inlined_call_operand.vmem [shape: s32[1,128], index: 6, kind: input, shape index: {}]   ;;  %s2085_s7 = inlined_call_operand.vmem [shape: f32[8,128], index: 7, kind: input, shape index: {}]   ;;  %s2086_s8 = inlined_call_operand.vmem [shape: f32[128,8], index: 8, kind: input, shape index: {}]   ;;  %s2087_s9 = inlined_call_operand.vmem [shape: f32[1,128], index: 9, kind: input, shape index: {}]   ;;  %s2088_s10 = inlined_call_operand.vmem [shape: bf16[16,128], index: 10, kind: output, shape index: {}]   ;;  %s2089_s1 = inlined_call_operand.vmem [shape: s32[2], index: 1, kind: input, shape index: {}]   ;;  %s2090_s2 = inlined_call_operand.vmem [shape: s32[2], index: 2, kind: input, shape index: {}]   ;;  %s2091_s3 = inlined_call_operand.vmem [shape: s32[2], index: 3, kind: input, shape index: {}]   ;;  %s2092_s4 = inlined_call_operand.vmem [shape: s32[2], index: 4, kind: input, shape index: {}]  }
   0x1   :  { %s15_s15 = sshll.u32 %s2082_s0, 4  ;;  %s19_s18 = sshll.u32 %s2089_s1, 4  ;;  %s16_s15 = int_to_ptr.vmem [resolvable:$true] %s15_s15  ;;  %s20_s18 = int_to_ptr.vmem [resolvable:$true] %s19_s18 }
   0x2   :  { %s1605_s19 = scalar_lea.vmem %s16_s15, 16  ;;  %p1610_p1 = scmp.lt.s32.totalorder %s16_s15, %s16_s15 }
   0x3   :  { %p1606_p0 = scmp.ne.s32.totalorder %s16_s15, %s1605_s19  ;;  %p1611_p2 = scmp.lt.s32.totalorder %s1605_s19, %s1605_s19 }
   0x5   :  { %p1612_p3 = por %p1611_p2, %p1610_p1 }
   0x7   :  { %p1613_p4 = pnand %p1612_p3, %p1606_p0 }
   0x9   :  { %1616 = shalt.err (!%p1613_p4)  }
   0xa   :  { %s1675_s20 = smov [#allocation4]   ;;  %s1617_s21 = scalar_lea.vmem %s20_s18, 16 }
   0xb   :  { %18 = dma.vmem_to_smem %s16_s15, 16, %s1675_s20, [#allocation3] }
   0xc   :  { %p1618_p5 = scmp.ne.s32.totalorder %s20_s18, %s1617_s21  ;;  %p1622_p6 = scmp.lt.s32.totalorder %s20_s18, %s20_s18 }
   0xd   :  { %p1623_p7 = scmp.lt.s32.totalorder %s1617_s21, %s1617_s21 }
   0xf   :  { %p1624_p8 = por %p1623_p7, %p1622_p6 }
  0x11   :  { %p1625_p9 = pnand %p1624_p8, %p1618_p5 }
  0x13   :  { %1628 = shalt.err (!%p1625_p9)  }
  0x14   :  { %s1676_s0 = smov [#allocation5]   ;;  %s23_s23 = sshll.u32 %s2090_s2, 4  ;;  %s24_s23 = int_to_ptr.vmem [resolvable:$true] %s23_s23 }
  0x15   :  { %22 = dma.vmem_to_smem %s20_s18, 16, %s1676_s0, [#allocation3] }
  0x16   :  { %s27_s26 = sshll.u32 %s2091_s3, 4  ;;  %s1629_s27 = scalar_lea.vmem %s24_s23, 16  ;;  %s28_s26 = int_to_ptr.vmem [resolvable:$true] %s27_s26 }
  0x17   :  { %p1630_p10 = scmp.ne.s32.totalorder %s24_s23, %s1629_s27  ;;  %p1634_p11 = scmp.lt.s32.totalorder %s24_s23, %s24_s23 }
  0x18   :  { %p1635_p12 = scmp.lt.s32.totalorder %s1629_s27, %s1629_s27 }
  0x1a   :  { %p1636_p13 = por %p1635_p12, %p1634_p11 }
  0x1c   :  { %p1637_p0 = pnand %p1636_p13, %p1630_p10 }
  0x1e   :  { %1640 = shalt.err (!%p1637_p0)  }
  0x1f   :  { %s1677_s28 = smov [#allocation6]   ;;  %s1641_s29 = scalar_lea.vmem %s28_s26, 16 }
  0x20   :  { %26 = dma.vmem_to_smem %s24_s23, 16, %s1677_s28, [#allocation3] }
  0x21   :  { %p1642_p1 = scmp.ne.s32.totalorder %s28_s26, %s1641_s29  ;;  %p1646_p2 = scmp.lt.s32.totalorder %s28_s26, %s28_s26 }
  0x22   :  { %p1647_p3 = scmp.lt.s32.totalorder %s1641_s29, %s1641_s29 }
  0x24   :  { %p1648_p4 = por %p1647_p3, %p1646_p2 }
  0x26   :  { %p1649_p5 = pnand %p1648_p4, %p1642_p1 }
  0x28   :  { %1652 = shalt.err (!%p1649_p5)  }
  0x29   :  { %s1678_s2 = smov [#allocation7]   ;;  %s31_s11 = sshll.u32 %s2092_s4, 4  ;;  %s32_s11 = int_to_ptr.vmem [resolvable:$true] %s31_s11 }
  0x2a   :  { %30 = dma.vmem_to_smem %s28_s26, 16, %s1678_s2, [#allocation3] }
  0x2b   :  { %s1653_s12 = scalar_lea.vmem %s32_s11, 16  ;;  %p1658_p7 = scmp.lt.s32.totalorder %s32_s11, %s32_s11 }
  0x2c   :  { %p1654_p6 = scmp.ne.s32.totalorder %s32_s11, %s1653_s12  ;;  %p1659_p8 = scmp.lt.s32.totalorder %s1653_s12, %s1653_s12 }
  0x2e   :  { %p1660_p9 = por %p1659_p8, %p1658_p7 }
  0x30   :  { %p1661_p10 = pnand %p1660_p9, %p1654_p6 }
  0x32   :  { %1664 = shalt.err (!%p1661_p10)  }
  0x33   :  { %s1679_s13 = smov [#allocation8]  }
  0x34   :  { %34 = dma.vmem_to_smem %s32_s11, 16, %s1679_s13, [#allocation3] }
  0x35   :  { %1669 = dma.done.wait [#allocation3], 80 }
  0x36   :  { %1670 = vsyncadd [#allocation3], 4294967216 }
  0x37   :  { %36 = sfence }
  0x38   :  { %s1754_s14 = smov 0  }
  0x39 LB: > { %s1760_s4 = sadd.s32 4294967295, %s1673_s14   ;;  %p1190_p11 = scmp.ge.s32.totalorder %s1673_s14, 1  ;;  %s1673_s14 = sphi %s1754_s14, %s42_s14  }
  0x3a   : > { %p233_p12 = scmp.lt.s32.totalorder %s1673_s14, 3 }
  0x3c   : > { %p234_p13 = pnand %p1190_p11, %p233_p12 }
  0x3d   : > { %s266_s15 = sld [smem:[#allocation5 + %s1760_s4]] (!%p234_p13) }
  0x3e   : > { %237 = sbr.rel (%p234_p13) target bundleno = 1314 (0x522), region = 40  ;;  %s274_s16 = sld [smem:[#allocation5 + %s1760_s4]] (!%p234_p13) }
  0x3f   : > { %s279_s17 = sld [smem:[#allocation4 + %s1760_s4]] (!%p234_p13) }
  0x40   : > { %s286_s18 = sld [smem:[#allocation6 + %s1760_s4]] (!%p234_p13) }
  0x41   : > { %s1769_s19 = sld [smem:[#allocation7 + %s1760_s4]] (!%p234_p13) }
  0x42   : > { %s290_s20 = sld [smem:[#allocation8 + %s1760_s4]] (!%p234_p13) }
  0x43   : > { %s1191_s21 = sshll.u32 (!%p234_p13), %s266_s15, 4 }
  0x44   : > { %p275_p0 = scmp.lt.s32.totalorder (!%p234_p13), %s274_s16, 0  ;;  %p268_p1 = scmp.lt.s32.totalorder (!%p234_p13), %s1191_s21, 15 }
  0x45   : > { %p280_p2 = scmp.lt.s32.totalorder %s279_s17, 0 }
  0x46   : > { %s2094_s16 = smov (!%p275_p0, %s274_s16), 0  ;;  %s2096_s21 = smov (!%p268_p1, %s1191_s21), 15 }
  0x47   : > { %s277_s22 = scalar_lea.vmem %s2084_s6, %s2094_s16  ;;  %s1192_s23 = sshll.u32 %s2096_s21, 2 }
  0x48   : > { %s1781_s26 = scalar_lea.vmem %s2083_s5, %s1192_s23  ;;  %s2098_s17 = smov (!%p280_p2, %s279_s17), 0 }
  0x49   : > { %s1193_s27 = sshll.u32 %s2098_s17, 3  ;;  %p1194_p3 = scmp.eq.s32.totalorder %s286_s18, 0 }
  0x4a   : > { %s1786_s2 = scalar_lea.vmem %s2088_s10, %s1193_s27  ;;  %v1680_v0 = vmov (!%p1194_p3), 0.0  }
  0x4b   : > { %294 = sbr.rel (%p1194_p3) target bundleno = 82 (0x52), region = 44  ;;  %295 = vst [vmem:[#allocation2] sm:$0xff] (!%p1194_p3), %v1680_v0  ;;  %296 = vst [vmem:[#allocation2 + $0x8] sm:$0xff] (!%p1194_p3), %v1680_v0 }
  0x52 PF: > { %p1195_p4 = scmp.eq.s32.totalorder %s290_s20, 0 }
  0x53   : > { %v332_v1 = vld [vmem:[%s2086_s8] sm:$0xff] (!%p1195_p4)  ;;  %v333_v2 = vld [vmem:[%s2086_s8 + $0x8] sm:$0xff] (!%p1195_p4)  ;;  %v334_v3 = vld [vmem:[%s2086_s8 + $0x10] sm:$0xff] (!%p1195_p4)  ;;  %vm590_vm8 = vcmask (!%p1195_p4), 64512   ;;  %s1979_s29 = sld [smem:[#allocation4 + %s1760_s4]] (!%p1195_p4) }
  0x54   : > { %299 = sbr.rel (%p1195_p4) target bundleno = 815 (0x32f), region = 48  ;;  %v1484_v4 = vpack.c.bf16 (!%p1195_p4), %v333_v2, %v332_v1  ;;  %v335_v5 = vld [vmem:[%s2086_s8 + $0x18] sm:$0xff] (!%p1195_p4)  ;;  %v336_v7 = vld [vmem:[%s2086_s8 + $0x20] sm:$0xff] (!%p1195_p4)  ;;  %v337_v8 = vld [vmem:[%s2086_s8 + $0x28] sm:$0xff] (!%p1195_p4) }
  0x55   : > { %v1488_v6 = vpack.c.bf16 (!%p1195_p4), %v335_v5, %v334_v3  ;;  %v1492_v9 = vpack.c.bf16 (!%p1195_p4), %v337_v8, %v336_v7  ;;  %v1807_v10 = vld [vmem:[%s1781_s26] sm:$0xff] (!%p1195_p4)   ;;  %v338_v11 = vld [vmem:[%s2086_s8 + $0x30] sm:$0xff] (!%p1195_p4)  ;;  %v339_v12 = vld [vmem:[%s2086_s8 + $0x38] sm:$0xff] (!%p1195_p4) }
  0x56   : > { %1485 = vmatprep.subr.bf16.mxu0 (!%p1195_p4), %v1484_v4  ;;  %v1226_v13 = vunpack.c.l.bf16 (!%p1195_p4), %v1807_v10  ;;  %v1496_v14 = vpack.c.bf16 (!%p1195_p4), %v339_v12, %v338_v11  ;;  %v340_v15 = vld [vmem:[%s2086_s8 + $0x40] sm:$0xff] (!%p1195_p4)  ;;  %v341_v16 = vld [vmem:[%s2086_s8 + $0x48] sm:$0xff] (!%p1195_p4)  ;;  %v342_v18 = vld [vmem:[%s2086_s8 + $0x50] sm:$0xff] (!%p1195_p4)  ;;  %v1227_v28 = vunpack.c.h.bf16 (!%p1195_p4), %v1807_v10 }
  0x57   : > { %1487 = vmatpush3.bf16.msra.mxu0 (!%p1195_p4), %v1484_v4  ;;  %v1500_v17 = vpack.c.bf16 (!%p1195_p4), %v341_v16, %v340_v15  ;;  %v343_v19 = vld [vmem:[%s2086_s8 + $0x58] sm:$0xff] (!%p1195_p4)  ;;  %v344_v21 = vld [vmem:[%s2086_s8 + $0x60] sm:$0xff] (!%p1195_p4)  ;;  %v345_v22 = vld [vmem:[%s2086_s8 + $0x68] sm:$0xff] (!%p1195_p4) }
  0x58   : > { %1489 = vmatprep.subr.bf16.mxu0 (!%p1195_p4), %v1488_v6  ;;  %1374 = vmatprep.mubr.f32.mxu0 (!%p1195_p4), %v1226_v13  ;;  %v1504_v20 = vpack.c.bf16 (!%p1195_p4), %v343_v19, %v342_v18  ;;  %v1508_v23 = vpack.c.bf16 (!%p1195_p4), %v345_v22, %v344_v21  ;;  %v346_v24 = vld [vmem:[%s2086_s8 + $0x70] sm:$0xff] (!%p1195_p4)  ;;  %v347_v25 = vld [vmem:[%s2086_s8 + $0x78] sm:$0xff] (!%p1195_p4)  ;;  %v1843_v27 = vld [vmem:[%s1781_s26 + $0x8] sm:$0xff] (!%p1195_p4)  }
  0x59   : > { %v1512_v26 = vpack.c.bf16 (!%p1195_p4), %v347_v25, %v346_v24  ;;  %v1230_v29 = vunpack.c.l.bf16 (!%p1195_p4), %v1843_v27  ;;  %v1848_v30 = vld [vmem:[%s1781_s26 + $0x10] sm:$0xff] (!%p1195_p4)   ;;  %v1231_v31 = vunpack.c.h.bf16 (!%p1195_p4), %v1843_v27  ;;  %v1857_v33 = vld [vmem:[%s1781_s26 + $0x18] sm:$0xff] (!%p1195_p4)   ;;  %v1866_v36 = vld [vmem:[%s1781_s26 + $0x20] sm:$0xff] (!%p1195_p4)   ;;  %s1212_s4 = sshll.u32 (!%p1195_p4), %s1979_s29, 4 }
  0x5a   : > { %v1234_v32 = vunpack.c.l.bf16 (!%p1195_p4), %v1848_v30  ;;  %v1235_v34 = vunpack.c.h.bf16 (!%p1195_p4), %v1848_v30  ;;  %v1238_v35 = vunpack.c.l.bf16 (!%p1195_p4), %v1857_v33  ;;  %v1239_v37 = vunpack.c.h.bf16 (!%p1195_p4), %v1857_v33  ;;  %v1875_v39 = vld [vmem:[%s1781_s26 + $0x28] sm:$0xff] (!%p1195_p4)   ;;  %v1884_v42 = vld [vmem:[%s1781_s26 + $0x30] sm:$0xff] (!%p1195_p4)   ;;  %v1893_v45 = vld [vmem:[%s1781_s26 + $0x38] sm:$0xff] (!%p1195_p4)  }
  0x5b   : > { %1491 = vmatpush3.bf16.msra.mxu0 %v1488_v6  ;;  %v1242_v38 = vunpack.c.l.bf16 %v1866_v36  ;;  %v1243_v40 = vunpack.c.h.bf16 %v1866_v36  ;;  %v1246_v41 = vunpack.c.l.bf16 %v1875_v39  ;;  %v1247_v43 = vunpack.c.h.bf16 %v1875_v39  ;;  %v589_v49 = vld [vmem:[%s2085_s7] sm:$0xff] }
  0x5c   : > { %1493 = vmatprep.subr.bf16.mxu0 %v1492_v9  ;;  %v1250_v44 = vunpack.c.l.bf16 %v1884_v42  ;;  %v1251_v46 = vunpack.c.h.bf16 %v1884_v42  ;;  %v1254_v47 = vunpack.c.l.bf16 %v1893_v45  ;;  %v1255_v48 = vunpack.c.h.bf16 %v1893_v45  ;;  %1398 = vmatprep.subr.mxu1 %v589_v49 }
  0x5d   : > { %1399 = vmatpush3.msra.mxu1 %v589_v49 }
  0x5f   : > { %1495 = vmatpush3.bf16.msra.mxu0 %v1492_v9 }
  0x60   : > { %1497 = vmatprep.subr.bf16.mxu0 %v1496_v14 }
  0x63   : > { %1499 = vmatpush3.bf16.msra.mxu0 %v1496_v14 }
  0x64   : > { %1501 = vmatprep.subr.bf16.mxu0 %v1500_v17 }
  0x67   : > { %1503 = vmatpush3.bf16.msra.mxu0 %v1500_v17 }
  0x68   : > { %1505 = vmatprep.subr.bf16.mxu0 %v1504_v20 }
  0x6b   : > { %1507 = vmatpush3.bf16.msra.mxu0 %v1504_v20 }
  0x6c   : > { %1509 = vmatprep.subr.bf16.mxu0 %v1508_v23 }
  0x6f   : > { %1511 = vmatpush3.bf16.msra.mxu0 %v1508_v23 }
  0x70   : > { %1513 = vmatprep.subr.bf16.mxu0 %v1512_v26 }
  0x73   : > { %1515 = vmatpush3.bf16.msra.mxu0 %v1512_v26 }
  0x76   : > { %1375 = vmatmul.mubr.f32.vlgmr.msra.gmra.mrb[0].mxu0 %v1227_v28 }
  0x77   : > { %1377 = vmatprep.mubr.f32.mxu0 %v1230_v29 }
  0x7a   : > { %1378 = vmatmul.mubr.f32.gmra.mrb[2].mxu0 %v1231_v31 }
  0x7b   : > { %1380 = vmatprep.mubr.f32.mxu0 %v1234_v32 }
  0x7e   : > { %1381 = vmatmul.mubr.f32.gmra.mrb[4].mxu0 %v1235_v34 }
  0x7f   : > { %1383 = vmatprep.mubr.f32.mxu0 %v1238_v35 }
  0x82   : > { %1384 = vmatmul.mubr.f32.gmra.mrb[6].mxu0 %v1239_v37 }
  0x83   : > { %1386 = vmatprep.mubr.f32.mxu0 %v1242_v38 }
  0x86   : > { %1387 = vmatmul.mubr.f32.gmra.mrb[8].mxu0 %v1243_v40 }
  0x87   : > { %1389 = vmatprep.mubr.f32.mxu0 %v1246_v41 }
  0x8a   : > { %1390 = vmatmul.mubr.f32.gmra.mrb[10].mxu0 %v1247_v43 }
  0x8b   : > { %1392 = vmatprep.mubr.f32.mxu0 %v1250_v44 }
  0x8e   : > { %1393 = vmatmul.mubr.f32.gmra.mrb[12].mxu0 %v1251_v46 }
  0x8f   : > { %1395 = vmatprep.mubr.f32.mxu0 %v1254_v47 }
  0x92   : > { %1396 = vmatmul.mubr.f32.gmra.mrb[14].mxu0 %v1255_v48 }
 0x149   : > { %v1376_v50 = vpop.f32.mrb[0].mxu0 }
 0x14a   : > { %vm494_vm0 = vcmp.gt.f32.partialorder %v1376_v50, 0.0  ;;  %v510_v51 = vmul.f32 0.2, %v1376_v50  ;;  %v414_v52 = vpop.f32.mrb[1].mxu0 }
 0x14b   : > { %vm493_vm1 = vcmp.gt.f32.partialorder %v414_v52, 0.0  ;;  %v509_v53 = vmul.f32 0.2, %v414_v52 }
 0x14c   : > { %v526_v54 = vsel %vm494_vm0, %v1376_v50, %v510_v51 }
 0x14d   : > { %v542_v55 = vsub.f32 0.0, %v526_v54  ;;  %v525_v56 = vsel %vm493_vm1, %v414_v52, %v509_v53  ;;  %v1379_v57 = vpop.f32.mrb[2].mxu0  ;;  %vm1682_vm1 = vmmov 0  }
 0x14e   : > { %v541_v58 = vsub.f32 0.0, %v525_v56  ;;  %vm496_vm2 = vcmp.gt.f32.partialorder %v1379_v57, 0.0  ;;  %v512_v59 = vmul.f32 0.2, %v1379_v57  ;;  %v424_v60 = vpop.f32.mrb[3].mxu0 }
 0x14f   : > { %v559_v61 = vmul.f32 1.442695, %v542_v55  ;;  %vm495_vm3 = vcmp.gt.f32.partialorder %v424_v60, 0.0  ;;  %v511_v62 = vmul.f32 0.2, %v424_v60 }
 0x150   : > { %v557_v63 = vmul.f32 1.442695, %v541_v58  ;;  %v528_v0 = vsel %vm496_vm2, %v1379_v57, %v512_v59 }
 0x151   : > { %v544_v1 = vsub.f32 0.0, %v528_v0  ;;  %v527_v2 = vsel %vm495_vm3, %v424_v60, %v511_v62  ;;  %v1382_v3 = vpop.f32.mrb[4].mxu0 }
 0x152   : > { %1565 = vpow2.f32 %v557_v63  ;;  %v543_v4 = vsub.f32 0.0, %v527_v2  ;;  %vm498_vm4 = vcmp.gt.f32.partialorder %v1382_v3, 0.0  ;;  %v514_v5 = vmul.f32 0.2, %v1382_v3  ;;  %v434_v6 = vpop.f32.mrb[5].mxu0 }
 0x153   : > { %1567 = vpow2.f32 %v559_v61  ;;  %v563_v7 = vmul.f32 1.442695, %v544_v1  ;;  %vm497_vm5 = vcmp.gt.f32.partialorder %v434_v6, 0.0  ;;  %v513_v8 = vmul.f32 0.2, %v434_v6 }
 0x154   : > { %v561_v9 = vmul.f32 1.442695, %v543_v4  ;;  %v530_v11 = vsel %vm498_vm4, %v1382_v3, %v514_v5 }
 0x155   : > { %v546_v12 = vsub.f32 0.0, %v530_v11  ;;  %v529_v14 = vsel %vm497_vm5, %v434_v6, %v513_v8  ;;  %v1385_v15 = vpop.f32.mrb[6].mxu0 }
 0x156   : > { %1569 = vpow2.f32 %v561_v9  ;;  %v545_v16 = vsub.f32 0.0, %v529_v14  ;;  %vm500_vm6 = vcmp.gt.f32.partialorder %v1385_v15, 0.0  ;;  %v516_v17 = vmul.f32 0.2, %v1385_v15  ;;  %v444_v18 = vpop.f32.mrb[7].mxu0 }
 0x157   : > { %1571 = vpow2.f32 %v563_v7  ;;  %v567_v19 = vmul.f32 1.442695, %v546_v12  ;;  %vm499_vm7 = vcmp.gt.f32.partialorder %v444_v18, 0.0  ;;  %v515_v20 = vmul.f32 0.2, %v444_v18 }
 0x158   : > { %v565_v21 = vmul.f32 1.442695, %v545_v16  ;;  %v532_v22 = vsel %vm500_vm6, %v1385_v15, %v516_v17 }
 0x159   : > { %v548_v23 = vsub.f32 0.0, %v532_v22  ;;  %v531_v24 = vsel %vm499_vm7, %v444_v18, %v515_v20  ;;  %v1388_v25 = vpop.f32.mrb[8].mxu0 }
 0x15a   : > { %1573 = vpow2.f32 %v565_v21  ;;  %v547_v26 = vsub.f32 0.0, %v531_v24  ;;  %vm502_vm9 = vcmp.gt.f32.partialorder %v1388_v25, 0.0  ;;  %v518_v49 = vmul.f32 0.2, %v1388_v25  ;;  %v454_v50 = vpop.f32.mrb[9].mxu0 }
 0x15b   : > { %1575 = vpow2.f32 %v567_v19  ;;  %v571_v51 = vmul.f32 1.442695, %v548_v23  ;;  %vm501_vm10 = vcmp.gt.f32.partialorder %v454_v50, 0.0  ;;  %v517_v52 = vmul.f32 0.2, %v454_v50 }
 0x15c   : > { %v1566_v53 = vpop.eup %1565  ;;  %v569_v54 = vmul.f32 1.442695, %v547_v26  ;;  %v534_v55 = vsel %vm502_vm9, %v1388_v25, %v518_v49 }
 0x15d   : > { %v1568_v56 = vpop.eup %1567  ;;  %v550_v57 = vsub.f32 0.0, %v534_v55  ;;  %v533_v58 = vsel %vm501_vm10, %v454_v50, %v517_v52  ;;  %v1391_v59 = vpop.f32.mrb[10].mxu0  ;;  %1400 = vmatprep.mubr.msk.f32.mxu1 %vm590_vm8, %v1566_v53 }
 0x15e   : > { %1577 = vpow2.f32 %v569_v54  ;;  %v549_v60 = vsub.f32 0.0, %v533_v58  ;;  %vm504_vm11 = vcmp.gt.f32.partialorder %v1391_v59, 0.0  ;;  %v520_v61 = vmul.f32 0.2, %v1391_v59  ;;  %v464_v62 = vpop.f32.mrb[11].mxu0  ;;  %1401 = vmatmul.mubr.msk.f32.vlgmr.msra.gmra.mrb[0].mxu1 %vm590_vm8, %v1568_v56 }
 0x15f   : > { %1579 = vpow2.f32 %v571_v51  ;;  %v575_v63 = vmul.f32 1.442695, %v550_v57  ;;  %vm503_vm12 = vcmp.gt.f32.partialorder %v464_v62, 0.0  ;;  %v519_v0 = vmul.f32 0.2, %v464_v62 }
 0x160   : > { %v1570_v1 = vpop.eup %1569  ;;  %v573_v2 = vmul.f32 1.442695, %v549_v60  ;;  %v536_v3 = vsel %vm504_vm11, %v1391_v59, %v520_v61 }
 0x161   : > { %v1572_v4 = vpop.eup %1571  ;;  %v552_v5 = vsub.f32 0.0, %v536_v3  ;;  %v535_v6 = vsel %vm503_vm12, %v464_v62, %v519_v0  ;;  %v1394_v7 = vpop.f32.mrb[12].mxu0  ;;  %1403 = vmatprep.mubr.msk.f32.mxu1 %vm590_vm8, %v1570_v1  ;;  %v787_v3 = vlaneseq }
 0x162   : > { %1581 = vpow2.f32 %v573_v2  ;;  %v551_v8 = vsub.f32 0.0, %v535_v6  ;;  %vm506_vm13 = vcmp.gt.f32.partialorder %v1394_v7, 0.0  ;;  %v522_v9 = vmul.f32 0.2, %v1394_v7  ;;  %v474_v11 = vpop.f32.mrb[13].mxu0  ;;  %1404 = vmatmul.mubr.msk.f32.gmra.mrb[2].mxu1 %vm590_vm8, %v1572_v4 }
 0x163   : > { %1583 = vpow2.f32 %v575_v63  ;;  %v579_v12 = vmul.f32 1.442695, %v552_v5  ;;  %vm505_vm14 = vcmp.gt.f32.partialorder %v474_v11, 0.0  ;;  %v521_v14 = vmul.f32 0.2, %v474_v11 }
 0x164   : > { %v1574_v15 = vpop.eup %1573  ;;  %v577_v16 = vmul.f32 1.442695, %v551_v8  ;;  %v538_v17 = vsel %vm506_vm13, %v1394_v7, %v522_v9  ;;  %v1681_v2 = vmov 0.0   ;;  %v1929_v4 = vshrl.u32 %v787_v3, 7  ;;  %v784_v5 = vld [vmem:[%s2087_s9] sm:$0x1] }
 0x165   : > { %v1576_v18 = vpop.eup %1575  ;;  %v554_v19 = vsub.f32 0.0, %v538_v17  ;;  %v537_v20 = vsel %vm505_vm14, %v474_v11, %v521_v14  ;;  %v1397_v21 = vpop.f32.mrb[14].mxu0  ;;  %1406 = vmatprep.mubr.msk.f32.mxu1 %vm590_vm8, %v1574_v15  ;;  %1424 = vmatprep.subr.bf16.mxu1 %v1681_v2  ;;  %v785_v6 = vsub.f32 1.0, %v784_v5 }
 0x166   : > { %1585 = vpow2.f32 %v577_v16  ;;  %v553_v22 = vsub.f32 0.0, %v537_v20  ;;  %vm508_vm15 = vcmp.gt.f32.partialorder %v1397_v21, 0.0  ;;  %v524_v23 = vmul.f32 0.2, %v1397_v21  ;;  %v484_v24 = vpop.f32.mrb[15].mxu0  ;;  %1407 = vmatmul.mubr.msk.f32.gmra.mrb[4].mxu1 %vm590_vm8, %v1576_v18 }
 0x167   : > { %1587 = vpow2.f32 %v579_v12  ;;  %v583_v25 = vmul.f32 1.442695, %v554_v19  ;;  %vm507_vm0 = vcmp.gt.f32.partialorder %v484_v24, 0.0  ;;  %v523_v26 = vmul.f32 0.2, %v484_v24 }
 0x168   : > { %v1578_v49 = vpop.eup %1577  ;;  %v581_v50 = vmul.f32 1.442695, %v553_v22  ;;  %v540_v51 = vsel %vm508_vm15, %v1397_v21, %v524_v23  ;;  %v1935_v7 = vsub.s32 0, %v1929_v4 }
 0x169   : > { %v1580_v52 = vpop.eup %1579  ;;  %v556_v53 = vsub.f32 0.0, %v540_v51  ;;  %v539_v54 = vsel %vm507_vm0, %v484_v24, %v523_v26  ;;  %1409 = vmatprep.mubr.msk.f32.mxu1 %vm590_vm8, %v1578_v49 }
 0x16a   : > { %1589 = vpow2.f32 %v581_v50  ;;  %v555_v55 = vsub.f32 0.0, %v539_v54  ;;  %1410 = vmatmul.mubr.msk.f32.gmra.mrb[6].mxu1 %vm590_vm8, %v1580_v52  ;;  %v1938_v8 = vrot.slane %v785_v6, %v1935_v7  ;;  %v1944_v11 = vrot.slane %v784_v5, %v1935_v7  ;;  %v856_v6 = vld [vmem:[%s277_s22] sm:$0x1] }
 0x16b   : > { %1591 = vpow2.f32 %v583_v25  ;;  %v587_v56 = vmul.f32 1.442695, %v556_v53 }
 0x16c   : > { %v1582_v57 = vpop.eup %1581  ;;  %v585_v58 = vmul.f32 1.442695, %v555_v55  ;;  %v793_v9 = vmul.f32 %v1227_v28, %v1938_v8  ;;  %v792_v12 = vmul.f32 %v1226_v13, %v1938_v8  ;;  %v795_v15 = vmul.f32 %v1231_v31, %v1938_v8 }
 0x16d   : > { %v1584_v59 = vpop.eup %1583  ;;  %1412 = vmatprep.mubr.msk.f32.mxu1 %vm590_vm8, %v1582_v57  ;;  %v794_v17 = vmul.f32 %v1230_v29, %v1938_v8  ;;  %v797_v10 = vmul.f32 %v1235_v34, %v1938_v8  ;;  %v796_v31 = vmul.f32 %v1234_v32, %v1938_v8  ;;  %v799_v25 = vmul.f32 %v1239_v37, %v1938_v8 }
 0x16e   : > { %1593 = vpow2.f32 %v585_v58  ;;  %1413 = vmatmul.mubr.msk.f32.gmra.mrb[8].mxu1 %vm590_vm8, %v1584_v59  ;;  %v815_v14 = vadd.f32 %v1944_v11, %v793_v9  ;;  %v814_v16 = vadd.f32 %v1944_v11, %v792_v12  ;;  %v817_v20 = vadd.f32 %v1944_v11, %v795_v15 }
 0x16f   : > { %1595 = vpow2.f32 %v587_v56  ;;  %v816_v21 = vadd.f32 %v1944_v11, %v794_v17  ;;  %v819_v24 = vadd.f32 %v1944_v11, %v797_v10  ;;  %v818_v34 = vadd.f32 %v1944_v11, %v796_v31 }
 0x170   : > { %v1586_v60 = vpop.eup %1585  ;;  %v798_v30 = vmul.f32 %v1238_v35, %v1938_v8  ;;  %v821_v52 = vadd.f32 %v1944_v11, %v799_v25  ;;  %v801_v37 = vmul.f32 %v1243_v40, %v1938_v8  ;;  %v800_v33 = vmul.f32 %v1242_v38, %v1938_v8  ;;  %v874_v25 = vld [vmem:[#allocation2 + $0x8] sm:$0xff] }
 0x171   : > { %v1588_v61 = vpop.eup %1587  ;;  %1415 = vmatprep.mubr.msk.f32.mxu1 %vm590_vm8, %v1586_v60  ;;  %v803_v40 = vmul.f32 %v1247_v43, %v1938_v8  ;;  %v802_v36 = vmul.f32 %v1246_v41, %v1938_v8  ;;  %v805_v43 = vmul.f32 %v1251_v46, %v1938_v8  ;;  %v804_v39 = vmul.f32 %v1250_v44, %v1938_v8 }
 0x172   : > { %1416 = vmatmul.mubr.msk.f32.gmra.mrb[10].mxu1 %vm590_vm8, %v1588_v61  ;;  %v820_v54 = vadd.f32 %v1944_v11, %v798_v30  ;;  %v823_v58 = vadd.f32 %v1944_v11, %v801_v37  ;;  %v822_v60 = vadd.f32 %v1944_v11, %v800_v33  ;;  %v857_v9 = vstv %s1212_s4 }
 0x173   : > { %v824_v3 = vadd.f32 %v1944_v11, %v802_v36  ;;  %v807_v15 = vmul.f32 %v1255_v48, %v1938_v8  ;;  %v826_v44 = vadd.f32 %v1944_v11, %v804_v39  ;;  %v858_v17 = vsub.s32 %v856_v6, %v857_v9 }
 0x174   : > { %v1590_v62 = vpop.eup %1589 }
 0x175   : > { %v1592_v63 = vpop.eup %1591  ;;  %1418 = vmatprep.mubr.msk.f32.mxu1 %vm590_vm8, %v1590_v62  ;;  %v829_v10 = vadd.f32 %v1944_v11, %v807_v15  ;;  %v865_v45 = vrot.slane %v858_v17, %v1935_v7 }
 0x176   : > { %1419 = vmatmul.mubr.msk.f32.gmra.mrb[12].mxu1 %vm590_vm8, %v1592_v63 }
 0x177   : > { %vm866_vm2 = vcmp.eq.s32.totalorder %v1929_v4, %v865_v45 }
 0x178   : > { %v1594_v0 = vpop.eup %1593 }
 0x179   : > { %v1596_v1 = vpop.eup %1595  ;;  %1421 = vmatprep.mubr.msk.f32.mxu1 %vm590_vm8, %v1594_v0  ;;  %v825_v0 = vadd.f32 %v1944_v11, %v803_v40 }
 0x17a   : > { %1422 = vmatmul.mubr.msk.f32.gmra.mrb[14].mxu1 %vm590_vm8, %v1596_v1 }
 0x17b   : > { %1440 = vmatprep.mubr.msk.bf16.mxu1 %vm1682_vm1, %v1681_v2 }
 0x231   : > { %v1402_v28 = vpop.f32.mrb[0].mxu1 }
 0x232   : > { %v831_v18 = vmul.f32 %v1402_v28, %v815_v14  ;;  %v705_v19 = vpop.f32.mrb[1].mxu1  ;;  %v827_v14 = vadd.f32 %v1944_v11, %v805_v43 }
 0x233   : > { %v830_v13 = vmul.f32 %v814_v16, %v705_v19  ;;  %v806_v16 = vmul.f32 %v1254_v47, %v1938_v8 }
 0x235   : > { %v846_v22 = vpack.c.bf16 %v831_v18, %v830_v13  ;;  %v1405_v23 = vpop.f32.mrb[2].mxu1  ;;  %v828_v48 = vadd.f32 %v1944_v11, %v806_v16  ;;  %v1683_v11 = vmov 1.0|1.0  }
 0x236   : > { %v833_v27 = vmul.f32 %v1405_v23, %v817_v20  ;;  %v715_v29 = vpop.f32.mrb[3].mxu1 }
 0x237   : > { %v832_v26 = vmul.f32 %v816_v21, %v715_v29  ;;  %1425 = vmatpush3.bf16.msra.mxu1 %v846_v22  ;;  %v861_v21 = vadd.s32 8, %v1929_v4  ;;  %v873_v29 = vld [vmem:[#allocation2] sm:$0xff] }
 0x238   : > { %1426 = vmatprep.subr.bf16.mxu1 %v1681_v2 }
 0x239   : > { %v847_v32 = vpack.c.bf16 %v833_v27, %v832_v26  ;;  %v1408_v49 = vpop.f32.mrb[4].mxu1  ;;  %vm867_vm3 = vcmp.eq.s32.totalorder %v861_v21, %v865_v45 }
 0x23a   : > { %v835_v50 = vmul.f32 %v1408_v49, %v819_v24  ;;  %v725_v51 = vpop.f32.mrb[5].mxu1  ;;  %vm1215_vm4 = vmpackc.low %vm867_vm3, %vm866_vm2 }
 0x23b   : > { %v834_v53 = vmul.f32 %v818_v34, %v725_v51  ;;  %1427 = vmatpush3.bf16.msra.mxu1 %v847_v32 }
 0x23c   : > { %1428 = vmatprep.subr.bf16.mxu1 %v1681_v2 }
 0x23d   : > { %v848_v35 = vpack.c.bf16 %v835_v50, %v834_v53  ;;  %v1411_v55 = vpop.f32.mrb[6].mxu1 }
 0x23e   : > { %v837_v56 = vmul.f32 %v1411_v55, %v821_v52  ;;  %v735_v57 = vpop.f32.mrb[7].mxu1 }
 0x23f   : > { %v836_v59 = vmul.f32 %v820_v54, %v735_v57  ;;  %1429 = vmatpush3.bf16.msra.mxu1 %v848_v35 }
 0x240   : > { %1430 = vmatprep.subr.bf16.mxu1 %v1681_v2 }
 0x241   : > { %v849_v38 = vpack.c.bf16 %v837_v56, %v836_v59  ;;  %v1414_v61 = vpop.f32.mrb[8].mxu1 }
 0x242   : > { %v839_v62 = vmul.f32 %v1414_v61, %v823_v58  ;;  %v745_v63 = vpop.f32.mrb[9].mxu1 }
 0x243   : > { %v838_v1 = vmul.f32 %v822_v60, %v745_v63  ;;  %1431 = vmatpush3.bf16.msra.mxu1 %v849_v38 }
 0x244   : > { %1432 = vmatprep.subr.bf16.mxu1 %v1681_v2 }
 0x245   : > { %v850_v41 = vpack.c.bf16 %v839_v62, %v838_v1  ;;  %v1417_v5 = vpop.f32.mrb[10].mxu1 }
 0x246   : > { %v841_v46 = vmul.f32 %v1417_v5, %v825_v0  ;;  %v755_v12 = vpop.f32.mrb[11].mxu1 }
 0x247   : > { %v840_v42 = vmul.f32 %v824_v3, %v755_v12  ;;  %1433 = vmatpush3.bf16.msra.mxu1 %v850_v41 }
 0x248   : > { %1434 = vmatprep.subr.bf16.mxu1 %v1681_v2 }
 0x249   : > { %v851_v28 = vpack.c.bf16 %v841_v46, %v840_v42  ;;  %v1420_v18 = vpop.f32.mrb[12].mxu1 }
 0x24a   : > { %v843_v19 = vmul.f32 %v1420_v18, %v827_v14  ;;  %v765_v20 = vpop.f32.mrb[13].mxu1 }
 0x24b   : > { %v842_v13 = vmul.f32 %v826_v44, %v765_v20  ;;  %1435 = vmatpush3.bf16.msra.mxu1 %v851_v28 }
 0x24c   : > { %1436 = vmatprep.subr.bf16.mxu1 %v1681_v2 }
 0x24d   : > { %v852_v47 = vpack.c.bf16 %v843_v19, %v842_v13  ;;  %v1423_v8 = vpop.f32.mrb[14].mxu1 }
 0x24e   : > { %v845_v31 = vmul.f32 %v1423_v8, %v829_v10  ;;  %v775_v22 = vpop.f32.mrb[15].mxu1 }
 0x24f   : > { %v844_v23 = vmul.f32 %v828_v48, %v775_v22  ;;  %1437 = vmatpush3.bf16.msra.mxu1 %v852_v47 }
 0x250   : > { %1438 = vmatprep.subr.bf16.mxu1 %v1681_v2 }
 0x251   : > { %v853_v27 = vpack.c.bf16 %v845_v31, %v844_v23 }
 0x253   : > { %1439 = vmatpush3.bf16.msra.mxu1 %v853_v27 }
 0x256   : > { %1441 = vmatmul.mubr.msk.bf16.vlgmr.msra.gmra.mrb[16].mxu1 %vm1215_vm4, %v1683_v11 }
 0x329   : > { %v909_v24 = vpop.f32.mrb[16].mxu1 }
 0x32a   : > { %v916_v7 = vadd.f32 %v909_v24, %v873_v29  ;;  %v1442_v26 = vpop.f32.mrb[17].mxu1 }
 0x32b   : > { %v912_v34 = vpop.f32.mrb[18].mxu1 }
 0x32c   : > { %918 = vst [vmem:[#allocation2] sm:$0xff] %v916_v7  ;;  %v917_v30 = vadd.f32 %v912_v34, %v874_v25  ;;  %v1443_v32 = vpop.f32.mrb[19].mxu1 }
 0x32e   : > { %919 = vst [vmem:[#allocation2 + $0x8] sm:$0xff] %v917_v30 }
 0x32f PF: > { %p1217_p5 = scmp.eq.s32.totalorder %s1769_s19, 0 }
 0x330   : > { %v925_v2 = vld [vmem:[%s2086_s8] sm:$0xff] (!%p1217_p5)  ;;  %v926_v4 = vld [vmem:[%s2086_s8 + $0x8] sm:$0xff] (!%p1217_p5)  ;;  %v927_v49 = vld [vmem:[%s2086_s8 + $0x10] sm:$0xff] (!%p1217_p5)  ;;  %vm1023_vm7 = vcmask (!%p1217_p5), 64512  }
 0x331   : > { %922 = sbr.rel (%p1217_p5) target bundleno = 1314 (0x522), region = 52  ;;  %v1516_v50 = vpack.c.bf16 (!%p1217_p5), %v926_v4, %v925_v2  ;;  %v928_v51 = vld [vmem:[%s2086_s8 + $0x18] sm:$0xff] (!%p1217_p5)  ;;  %v929_v37 = vld [vmem:[%s2086_s8 + $0x20] sm:$0xff] (!%p1217_p5)  ;;  %v930_v53 = vld [vmem:[%s2086_s8 + $0x28] sm:$0xff] (!%p1217_p5) }
 0x332   : > { %v1520_v52 = vpack.c.bf16 (!%p1217_p5), %v928_v51, %v927_v49  ;;  %v1524_v54 = vpack.c.bf16 (!%p1217_p5), %v930_v53, %v929_v37  ;;  %v931_v35 = vld [vmem:[%s2086_s8 + $0x30] sm:$0xff] (!%p1217_p5)  ;;  %v932_v55 = vld [vmem:[%s2086_s8 + $0x38] sm:$0xff] (!%p1217_p5)  ;;  %v933_v57 = vld [vmem:[%s2086_s8 + $0x40] sm:$0xff] (!%p1217_p5) }
 0x333   : > { %1517 = vmatprep.subr.bf16.mxu0 (!%p1217_p5), %v1516_v50  ;;  %v923_v33 = vld [vmem:[#allocation2] sm:$0xff] (!%p1217_p5)  ;;  %v1528_v56 = vpack.c.bf16 (!%p1217_p5), %v932_v55, %v931_v35  ;;  %v934_v58 = vld [vmem:[%s2086_s8 + $0x48] sm:$0xff] (!%p1217_p5)  ;;  %v935_v59 = vld [vmem:[%s2086_s8 + $0x50] sm:$0xff] (!%p1217_p5) }
 0x334   : > { %1519 = vmatpush3.bf16.msra.mxu0 (!%p1217_p5), %v1516_v50  ;;  %1476 = vmatprep.mubr.f32.mxu0 (!%p1217_p5), %v923_v33  ;;  %v1532_v40 = vpack.c.bf16 (!%p1217_p5), %v934_v58, %v933_v57  ;;  %v936_v60 = vld [vmem:[%s2086_s8 + $0x58] sm:$0xff] (!%p1217_p5)  ;;  %v937_v38 = vld [vmem:[%s2086_s8 + $0x60] sm:$0xff] (!%p1217_p5)  ;;  %v938_v61 = vld [vmem:[%s2086_s8 + $0x68] sm:$0xff] (!%p1217_p5) }
 0x335   : > { %1521 = vmatprep.subr.bf16.mxu0 (!%p1217_p5), %v1520_v52  ;;  %v1536_v36 = vpack.c.bf16 (!%p1217_p5), %v936_v60, %v935_v59  ;;  %v1540_v62 = vpack.c.bf16 (!%p1217_p5), %v938_v61, %v937_v38  ;;  %v939_v63 = vld [vmem:[%s2086_s8 + $0x70] sm:$0xff] (!%p1217_p5)  ;;  %v940_v0 = vld [vmem:[%s2086_s8 + $0x78] sm:$0xff] (!%p1217_p5)  ;;  %v924_v1 = vld [vmem:[#allocation2 + $0x8] sm:$0xff] (!%p1217_p5) }
 0x336   : > { %v1544_v43 = vpack.c.bf16 (!%p1217_p5), %v940_v0, %v939_v63  ;;  %v1022_v3 = vld [vmem:[%s2085_s7] sm:$0xff] (!%p1217_p5) }
 0x337   : > { %1479 = vmatprep.subr.mxu1 (!%p1217_p5), %v1022_v3 }
 0x338   : > { %1523 = vmatpush3.bf16.msra.mxu0 %v1520_v52  ;;  %1480 = vmatpush3.msra.mxu1 %v1022_v3 }
 0x339   : > { %1525 = vmatprep.subr.bf16.mxu0 %v1524_v54 }
 0x33c   : > { %1527 = vmatpush3.bf16.msra.mxu0 %v1524_v54 }
 0x33d   : > { %1529 = vmatprep.subr.bf16.mxu0 %v1528_v56 }
 0x340   : > { %1531 = vmatpush3.bf16.msra.mxu0 %v1528_v56 }
 0x341   : > { %1533 = vmatprep.subr.bf16.mxu0 %v1532_v40 }
 0x344   : > { %1535 = vmatpush3.bf16.msra.mxu0 %v1532_v40 }
 0x345   : > { %1537 = vmatprep.subr.bf16.mxu0 %v1536_v36 }
 0x348   : > { %1539 = vmatpush3.bf16.msra.mxu0 %v1536_v36 }
 0x349   : > { %1541 = vmatprep.subr.bf16.mxu0 %v1540_v62 }
 0x34c   : > { %1543 = vmatpush3.bf16.msra.mxu0 %v1540_v62 }
 0x34d   : > { %1545 = vmatprep.subr.bf16.mxu0 %v1544_v43 }
 0x350   : > { %1547 = vmatpush3.bf16.msra.mxu0 %v1544_v43 }
 0x353   : > { %1477 = vmatmul.mubr.f32.vlgmr.msra.gmra.mrb[0].mxu0 %v924_v1 }
 0x426   : > { %v1478_v39 = vpop.f32.mrb[0].mxu0 }
 0x427   : > { %vm1017_vm5 = vcmp.eq.f32.partialorder %v1478_v39, 0.0  ;;  %v1007_v41 = vpop.f32.mrb[1].mxu0 }
 0x428   : > { %v1019_v5 = vsel %vm1017_vm5, 1e-12, %v1478_v39  ;;  %vm1016_vm6 = vcmp.eq.f32.partialorder %v1007_v41, 0.0 }
 0x429   : > { %v1018_v6 = vsel %vm1016_vm6, 1e-12, %v1007_v41 }
 0x42a   : > { %1597 = vrcp.f32 %v1018_v6 }
 0x42b   : > { %1599 = vrcp.f32 %v1019_v5 }
 0x434   : > { %v1598_v9 = vpop.eup %1597 }
 0x435   : > { %v1600_v46 = vpop.eup %1599  ;;  %1481 = vmatprep.mubr.msk.f32.mxu1 %vm1023_vm7, %v1598_v9 }
 0x436   : > { %1482 = vmatmul.mubr.msk.f32.vlgmr.msra.gmra.mrb[0].mxu1 %vm1023_vm7, %v1600_v46 }
 0x509   : > { %v1483_v12 = vpop.f32.mrb[0].mxu1 }
 0x50a   : > { %v1106_v14 = vmul.f32 %v1483_v12, %v924_v1  ;;  %v1096_v15 = vpop.f32.mrb[1].mxu1 }
 0x50b   : > { %v1105_v42 = vmul.f32 %v1096_v15, %v923_v33 }
 0x50c   : > { %v1110_v44 = vmin.f32 %v1106_v14, 0.0  ;;  %vm1108_vm8 = vcmp.gt.f32.partialorder %v1106_v14, 0.0 }
 0x50d   : > { %v1109_v16 = vmin.f32 %v1105_v42, 0.0  ;;  %vm1107_vm9 = vcmp.gt.f32.partialorder %v1105_v42, 0.0 }
 0x50e   : > { %v1113_v17 = vmul.f32 1.442695, %v1110_v44 }
 0x50f   : > { %v1111_v28 = vmul.f32 1.442695, %v1109_v16 }
 0x510   : > { %1601 = vpow2.f32 %v1113_v17 }
 0x511   : > { %1603 = vpow2.f32 %v1111_v28 }
 0x51a   : > { %v1602_v18 = vpop.eup %1601 }
 0x51b   : > { %v1604_v19 = vpop.eup %1603  ;;  %v1221_v20 = vadd.f32 -1.0, %v1602_v18 }
 0x51c   : > { %v1220_v10 = vadd.f32 -1.0, %v1604_v19 }
 0x51d   : > { %v1118_v13 = vsel %vm1108_vm8, %v1106_v14, %v1221_v20 }
 0x51e   : > { %v1117_v48 = vsel %vm1107_vm9, %v1105_v42, %v1220_v10 }
 0x51f   : > { %v1119_v21 = vpack.c.bf16 %v1118_v13, %v1117_v48 }
 0x521   : > { %1120 = vst [vmem:[%s1786_s2] sm:$0xff] %v1119_v21 }
 0x522 PF: > { %s42_s14 = sadd.s32 1, %s1673_s14  }
 0x523   : > { %p39_p6 = scmp.ge.s32.totalorder %s42_s14, 4  }
 0x525   :  { %41 = sbr.rel (!%p39_p6) target bundleno = 57 (0x39), region = 85 }

</bundles_post_ra>
